<compile_context>
chip_gen: v5e
topology: v5e:2x2
jax: 0.10.0
libtpu: 0.0.40
codegen_flags: <defaults>
</compile_context>

<pallas_src>
import functools

import jax
import jax.numpy as jnp
from jax.experimental import pallas as pl
from jax.experimental.pallas import tpu as pltpu

LANES = 128
SUBLANES = 8
VMEM_BUDGET_BYTES = 40 * 1024 * 1024   # conservative: fits v7x (64 MiB physical)
VMEM_LIMIT_BYTES = 48 * 1024 * 1024


def _round_up(v, m):
    return ((v + m - 1) // m) * m


def pg_baseline_kernel(x_ref, w1_ref, b1_ref, wh_ref, bh_ref, out_ref, *,
                       num_actions):
    # Hidden layer: (TB, Hp) = x(TB, D) @ W1(D, Hp) + b1, ReLU.
    # x arrives as f32 from HBM and is cast to bf16 here (MXU bf16, f32 acc).
    x = x_ref[...].astype(jnp.bfloat16)
    h = jnp.dot(x, w1_ref[...], preferred_element_type=jnp.float32)
    h = jnp.maximum(h + b1_ref[...], jnp.float32(0.0))

    # Fused action + value heads (one 128-lane MXU pass), bf16 in / f32 acc:
    #   heads = h @ [Wa | Wv | 0] + [ba | bv | 0]
    heads = jnp.dot(h.astype(jnp.bfloat16), wh_ref[...],
                    preferred_element_type=jnp.float32)
    heads = heads + bh_ref[...]

    tb, lanes = heads.shape
    lane = jax.lax.broadcasted_iota(jnp.int32, (tb, lanes), 1)
    is_action = lane < num_actions

    # Numerically stable softmax restricted to the action lanes (exact divide).
    logits = jnp.where(is_action, heads, jnp.float32(-jnp.inf))
    m = jnp.max(logits, axis=-1, keepdims=True)
    e = jnp.where(is_action, jnp.exp(logits - m), jnp.float32(0.0))
    denom = jnp.sum(e, axis=-1, keepdims=True)
    probs = e / denom

    # Packed lane-dense output: lanes [0, A) = probs, lane A = state value, rest 0.
    value_lane = jnp.where(lane == num_actions, heads, jnp.float32(0.0))
    out_ref[...] = (probs + value_lane).astype(out_ref.dtype)


def prepare_pg_baseline_params(w1, b1, wa, ba, wv, bv,
                               weight_dtype=jnp.bfloat16):
    """One-time weight prep (pad, fuse heads, cast). Call once per weight update."""
    D, H = w1.shape
    H2, A = wa.shape
    assert H2 == H and wv.shape == (H, 1) and A + 1 <= LANES

    f32 = jnp.float32
    Hp = _round_up(H, LANES)   # pad hidden dim to full lanes (zeros contribute 0)

    w1p = jnp.pad(w1.astype(f32), ((0, 0), (0, Hp - H))).astype(weight_dtype)
    b1p = jnp.pad(b1.reshape(1, H).astype(f32), ((0, 0), (0, Hp - H)))

    wh = jnp.concatenate([wa.astype(f32), wv.astype(f32)], axis=1)       # (H, A+1)
    wh = jnp.pad(wh, ((0, Hp - H), (0, LANES - (A + 1))))                # (Hp, 128)
    wh = wh.astype(weight_dtype)
    bh = jnp.concatenate([ba.reshape(1, A).astype(f32),
                          bv.reshape(1, 1).astype(f32)], axis=1)         # (1, A+1)
    bh = jnp.pad(bh, ((0, 0), (0, LANES - (A + 1))))                     # (1, 128)

    return {"w1p": w1p, "b1p": b1p, "wh": wh, "bh": bh,
            "input_dim": D, "hidden_padded": Hp, "num_actions": A}


def _pick_batch_tile(B, D, Hp, block_b):
    """Batch tile: >=2 grid steps when possible (v7x dual-core), VMEM-bounded."""
    if B > 2 * block_b:
        tb = block_b
    else:
        tb = _round_up(max(pl.cdiv(B, 2), SUBLANES), SUBLANES)
        tb = min(tb, _round_up(B, SUBLANES))

    def vmem_bytes(t):
        x_bytes = 2 * t * D * 4                 # double-buffered f32 x tile
        w_bytes = (D * Hp + Hp * LANES) * 2     # bf16 weights (resident)
        b_bytes = (Hp + LANES) * 4
        out_bytes = 2 * t * LANES * 4
        return x_bytes + w_bytes + b_bytes + out_bytes

    while tb > SUBLANES and vmem_bytes(tb) > VMEM_BUDGET_BYTES:
        tb = _round_up(tb // 2, SUBLANES)
    return tb


def pg_baseline_forward(x, params, *, block_b=512):
    """x:(B,D) f32; params from prepare_pg_baseline_params. Returns (probs, values)."""
    B, D = x.shape
    Hp = params["hidden_padded"]
    A = params["num_actions"]
    assert D == params["input_dim"]

    tb = _pick_batch_tile(B, D, Hp, block_b)
    grid_b = pl.cdiv(B, tb)
    Bp = grid_b * tb
    xs = x if Bp == B else jnp.pad(x, ((0, Bp - B), (0, 0)))

    kernel = functools.partial(pg_baseline_kernel, num_actions=A)

    cost = pl.CostEstimate(
        flops=int(2 * Bp * D * Hp + 2 * Bp * Hp * LANES),
        transcendentals=int(Bp * LANES),
        bytes_accessed=int(Bp * D * 4 + (D * Hp + Hp * LANES) * 2
                           + (Hp + LANES) * 4 + Bp * LANES * 4),
    )

    def build(single_buffer_weights):
        wmode = ({"pipeline_mode": pl.Buffered(1)} if single_buffer_weights else {})
        in_specs = [
            pl.BlockSpec((tb, D), lambda i: (i, 0)),                 # x: streamed f32
            pl.BlockSpec((D, Hp), lambda i: (0, 0), **wmode),        # W1 (bf16, resident)
            pl.BlockSpec((1, Hp), lambda i: (0, 0), **wmode),        # b1
            pl.BlockSpec((Hp, LANES), lambda i: (0, 0), **wmode),    # fused head weights
            pl.BlockSpec((1, LANES), lambda i: (0, 0), **wmode),     # fused head bias
        ]
        return pl.pallas_call(
            kernel,
            out_shape=jax.ShapeDtypeStruct((Bp, LANES), jnp.float32),
            grid=(grid_b,),
            in_specs=in_specs,
            out_specs=pl.BlockSpec((tb, LANES), lambda i: (i, 0)),
            compiler_params=pltpu.CompilerParams(
                dimension_semantics=("parallel",),
                vmem_limit_bytes=VMEM_LIMIT_BYTES),
            cost_estimate=cost,
        )

    try:
        packed = jax.block_until_ready(
            build(True)(xs, params["w1p"], params["b1p"], params["wh"], params["bh"]))
    except Exception:
        # Fallback if this Pallas build rejects single-buffered (Buffered(1)) specs.
        packed = build(False)(xs, params["w1p"], params["b1p"],
                              params["wh"], params["bh"])

    probs = packed[:B, :A]
    values = packed[:B, A:A + 1]
    return probs, values


def _reference_forward(x, w1, b1, wa, ba, wv, bv, cast_dtype=None):
    hp = jax.lax.Precision.HIGHEST
    xc, w1c = x, w1
    if cast_dtype is not None:
        xc = x.astype(cast_dtype).astype(jnp.float32)
        w1c = w1.astype(cast_dtype).astype(jnp.float32)
    h = jnp.maximum(jnp.dot(xc, w1c, precision=hp) + b1.reshape(1, -1), 0.0)
    scores = jnp.dot(h, wa, precision=hp) + ba.reshape(1, -1)
    probs = jax.nn.softmax(scores, axis=-1)
    values = jnp.dot(h, wv, precision=hp) + bv.reshape(1, -1)
    return probs, values


if __name__ == "__main__":
    # Small shapes consistent with the module (real model: D=6400, H=200, A=2).
    # H=200 exercises the pad-to-256 path; B=24 with block_b=16 exercises the
    # >=2-grid-step tiling (tb=16, 2 steps) and batch padding (24 -> 32).
    B, D, H, A = 24, 512, 200, 2

    key = jax.random.PRNGKey(0)
    kx, k1, k2, k3, k4, k5, k6 = jax.random.split(key, 7)

    x = jax.random.normal(kx, (B, D), dtype=jnp.float32)

    # Deterministic synthetic init (approx. torch Linear uniform(+-1/sqrt(fan_in))).
    def uinit(k, shape, fan_in):
        bound = 1.0 / jnp.sqrt(jnp.float32(fan_in))
        return jax.random.uniform(k, shape, jnp.float32, -bound, bound)

    w1 = uinit(k1, (D, H), D)
    b1 = uinit(k2, (H,), D)
    wa = uinit(k3, (H, A), H)
    ba = uinit(k4, (A,), H)
    wv = uinit(k5, (H, 1), H)
    bv = uinit(k6, (1,), H)

    params = prepare_pg_baseline_params(w1, b1, wa, ba, wv, bv)  # once per update
    probs, values = pg_baseline_forward(x, params, block_b=16)
    jax.block_until_ready((probs, values))

    assert probs.shape == (B, A) and values.shape == (B, 1)

    # Tight check vs. a reference that applies the same bf16 rounding to x/W1.
    ref_p, ref_v = _reference_forward(x, w1, b1, wa, ba, wv, bv,
                                      cast_dtype=jnp.bfloat16)
    assert jnp.allclose(probs, ref_p, atol=1e-2, rtol=1e-2)
    assert jnp.allclose(values, ref_v, atol=1e-2, rtol=1e-2)

    # Loose check vs. the pure-f32 reference (bf16 streaming error budget).
    ref_p32, ref_v32 = _reference_forward(x, w1, b1, wa, ba, wv, bv)
    assert jnp.allclose(probs, ref_p32, atol=5e-2, rtol=5e-2)
    assert jnp.allclose(values, ref_v32, atol=5e-2, rtol=5e-2)

    # Softmax sanity: exact division -> rows sum to 1 up to fp rounding.
    assert jnp.allclose(jnp.sum(probs, axis=-1), 1.0, atol=1e-5)

    print("KERNEL_OK")
</pallas_src>

<mosaic_0001>
module attributes {stable_mosaic.version = 11 : i64} {
  func.func @pg_baseline_kernel(%arg0: i32, %arg1: memref<16x512xf32, #tpu.memory_space<vmem>>, %arg2: memref<512x256xbf16, #tpu.memory_space<vmem>>, %arg3: memref<1x256xf32, #tpu.memory_space<vmem>>, %arg4: memref<256x128xbf16, #tpu.memory_space<vmem>>, %arg5: memref<1x128xf32, #tpu.memory_space<vmem>>, %arg6: memref<16x128xf32, #tpu.memory_space<vmem>>) attributes {dimension_semantics = [#tpu.dimension_semantics<parallel>], iteration_bounds = array<i64: 2>, scalar_prefetch = 0 : i64, scratch_operands = 0 : i64, tpu.core_type = #tpu.core_type<tc>, window_params = [{transform_indices = @transform_0, window_bounds = array<i64: 16, 512>}, {pipeline_mode = #tpu.pipeline_mode<synchronous>, transform_indices = @transform_1, window_bounds = array<i64: 512, 256>}, {pipeline_mode = #tpu.pipeline_mode<synchronous>, transform_indices = @transform_2, window_bounds = array<i64: 1, 256>}, {pipeline_mode = #tpu.pipeline_mode<synchronous>, transform_indices = @transform_3, window_bounds = array<i64: 256, 128>}, {pipeline_mode = #tpu.pipeline_mode<synchronous>, transform_indices = @transform_4, window_bounds = array<i64: 1, 128>}, {transform_indices = @transform_5, window_bounds = array<i64: 16, 128>}]} {
    %c0 = arith.constant 0 : index
    %c0_0 = arith.constant 0 : index
    %0 = vector.load %arg1[%c0, %c0_0] : memref<16x512xf32, #tpu.memory_space<vmem>>, vector<16x512xf32>
    %1 = arith.truncf %0 : vector<16x512xf32> to vector<16x512xbf16>
    %c0_1 = arith.constant 0 : index
    %c0_2 = arith.constant 0 : index
    %2 = vector.load %arg2[%c0_1, %c0_2] : memref<512x256xbf16, #tpu.memory_space<vmem>>, vector<512x256xbf16>
    %cst = arith.constant dense<0.000000e+00> : vector<16x256xf32>
    %3 = tpu.matmul %1, %2, %cst {dimension_numbers = #tpu.dot_dimension_numbers<[1], [0], [0], [1], [0, 0, 1, 1], [], []>} : vector<16x512xbf16>, vector<512x256xbf16>, vector<16x256xf32> -> vector<16x256xf32>
    %c0_3 = arith.constant 0 : index
    %c0_4 = arith.constant 0 : index
    %4 = vector.load %arg3[%c0_3, %c0_4] : memref<1x256xf32, #tpu.memory_space<vmem>>, vector<1x256xf32>
    %5 = vector.broadcast %4 : vector<1x256xf32> to vector<16x256xf32>
    %6 = arith.addf %3, %5 : vector<16x256xf32>
    %cst_5 = arith.constant 0.000000e+00 : f32
    %7 = vector.broadcast %cst_5 : f32 to vector<16x256xf32>
    %8 = arith.maximumf %6, %7 : vector<16x256xf32>
    %9 = arith.truncf %8 : vector<16x256xf32> to vector<16x256xbf16>
    %c0_6 = arith.constant 0 : index
    %c0_7 = arith.constant 0 : index
    %10 = vector.load %arg4[%c0_6, %c0_7] : memref<256x128xbf16, #tpu.memory_space<vmem>>, vector<256x128xbf16>
    %cst_8 = arith.constant dense<0.000000e+00> : vector<16x128xf32>
    %11 = tpu.matmul %9, %10, %cst_8 {dimension_numbers = #tpu.dot_dimension_numbers<[1], [0], [0], [1], [0, 0, 1, 1], [], []>} : vector<16x256xbf16>, vector<256x128xbf16>, vector<16x128xf32> -> vector<16x128xf32>
    %c0_9 = arith.constant 0 : index
    %c0_10 = arith.constant 0 : index
    %12 = vector.load %arg5[%c0_9, %c0_10] : memref<1x128xf32, #tpu.memory_space<vmem>>, vector<1x128xf32>
    %13 = vector.broadcast %12 : vector<1x128xf32> to vector<16x128xf32>
    %14 = arith.addf %11, %13 : vector<16x128xf32>
    %15 = tpu.iota {dimensions = array<i32: 1>} : vector<16x128xi32>
    %c2_i32 = arith.constant 2 : i32
    %16 = vector.broadcast %c2_i32 : i32 to vector<16x128xi32>
    %17 = arith.cmpi slt, %15, %16 : vector<16x128xi32>
    %cst_11 = arith.constant 0xFF800000 : f32
    %18 = vector.broadcast %cst_11 : f32 to vector<16x128xf32>
    %19 = arith.select %17, %14, %18 : vector<16x128xi1>, vector<16x128xf32>
    %cst_12 = arith.constant dense<0xFF800000> : vector<16xf32>
    %20 = vector.multi_reduction <maximumf>, %19, %cst_12 [1] : vector<16x128xf32> to vector<16xf32>
    %21 = vector.shape_cast %20 : vector<16xf32> to vector<16x1xf32>
    %22 = vector.broadcast %21 : vector<16x1xf32> to vector<16x128xf32>
    %23 = arith.subf %19, %22 : vector<16x128xf32>
    %24 = math.exp %23 : vector<16x128xf32>
    %cst_13 = arith.constant 0.000000e+00 : f32
    %25 = vector.broadcast %cst_13 : f32 to vector<16x128xf32>
    %26 = arith.select %17, %24, %25 : vector<16x128xi1>, vector<16x128xf32>
    %cst_14 = arith.constant dense<0.000000e+00> : vector<16xf32>
    %27 = vector.multi_reduction <add>, %26, %cst_14 [1] : vector<16x128xf32> to vector<16xf32>
    %28 = vector.shape_cast %27 : vector<16xf32> to vector<16x1xf32>
    %29 = vector.broadcast %28 : vector<16x1xf32> to vector<16x128xf32>
    %30 = arith.divf %26, %29 : vector<16x128xf32>
    %c2_i32_15 = arith.constant 2 : i32
    %31 = vector.broadcast %c2_i32_15 : i32 to vector<16x128xi32>
    %32 = arith.cmpi eq, %15, %31 : vector<16x128xi32>
    %cst_16 = arith.constant 0.000000e+00 : f32
    %33 = vector.broadcast %cst_16 : f32 to vector<16x128xf32>
    %34 = arith.select %32, %14, %33 : vector<16x128xi1>, vector<16x128xf32>
    %35 = arith.addf %30, %34 : vector<16x128xf32>
    %c0_17 = arith.constant 0 : index
    %c0_18 = arith.constant 0 : index
    %36 = vector.load %arg6[%c0_17, %c0_18] : memref<16x128xf32, #tpu.memory_space<vmem>>, vector<16x128xf32>
    tpu.vector_store %arg6[%c0_17, %c0_18], %35 {strides = array<i32>} : memref<16x128xf32, #tpu.memory_space<vmem>>, vector<16x128xf32>,
    return
  }
  func.func @transform_0(%arg0: i32) -> (i32, i32) {
    %c0_i32 = arith.constant 0 : i32
    %c0_i32_0 = arith.constant 0 : i32
    return %arg0, %c0_i32 : i32, i32
  }
  func.func @transform_1(%arg0: i32) -> (i32, i32) {
    %c0_i32 = arith.constant 0 : i32
    %c0_i32_0 = arith.constant 0 : i32
    %c0_i32_1 = arith.constant 0 : i32
    return %c0_i32, %c0_i32_0 : i32, i32
  }
  func.func @transform_2(%arg0: i32) -> (i32, i32) {
    %c0_i32 = arith.constant 0 : i32
    %c0_i32_0 = arith.constant 0 : i32
    %c0_i32_1 = arith.constant 0 : i32
    return %c0_i32, %c0_i32_0 : i32, i32
  }
  func.func @transform_3(%arg0: i32) -> (i32, i32) {
    %c0_i32 = arith.constant 0 : i32
    %c0_i32_0 = arith.constant 0 : i32
    %c0_i32_1 = arith.constant 0 : i32
    return %c0_i32, %c0_i32_0 : i32, i32
  }
  func.func @transform_4(%arg0: i32) -> (i32, i32) {
    %c0_i32 = arith.constant 0 : i32
    %c0_i32_0 = arith.constant 0 : i32
    %c0_i32_1 = arith.constant 0 : i32
    return %c0_i32, %c0_i32_0 : i32, i32
  }
  func.func @transform_5(%arg0: i32) -> (i32, i32) {
    %c0_i32 = arith.constant 0 : i32
    %c0_i32_0 = arith.constant 0 : i32
    return %arg0, %c0_i32 : i32, i32
  }
}

module attributes {stable_mosaic.version = 11 : i64} {
  func.func @pg_baseline_kernel(%arg0: i32, %arg1: memref<16x512xf32, #tpu.memory_space<vmem>>, %arg2: memref<512x256xbf16, #tpu.memory_space<vmem>>, %arg3: memref<1x256xf32, #tpu.memory_space<vmem>>, %arg4: memref<256x128xbf16, #tpu.memory_space<vmem>>, %arg5: memref<1x128xf32, #tpu.memory_space<vmem>>, %arg6: memref<16x128xf32, #tpu.memory_space<vmem>>) attributes {dimension_semantics = [#tpu.dimension_semantics<parallel>], iteration_bounds = array<i64: 2>, scalar_prefetch = 0 : i64, scratch_operands = 0 : i64, tpu.core_type = #tpu.core_type<tc>, window_params = [{transform_indices = @transform_0, window_bounds = array<i64: 16, 512>}, {pipeline_mode = #tpu.pipeline_mode<synchronous>, transform_indices = @transform_1, window_bounds = array<i64: 512, 256>}, {pipeline_mode = #tpu.pipeline_mode<synchronous>, transform_indices = @transform_2, window_bounds = array<i64: 1, 256>}, {pipeline_mode = #tpu.pipeline_mode<synchronous>, transform_indices = @transform_3, window_bounds = array<i64: 256, 128>}, {pipeline_mode = #tpu.pipeline_mode<synchronous>, transform_indices = @transform_4, window_bounds = array<i64: 1, 128>}, {transform_indices = @transform_5, window_bounds = array<i64: 16, 128>}]} {
    %c0 = arith.constant 0 : index
    %c0_0 = arith.constant 0 : index
    %0 = vector.load %arg1[%c0, %c0_0] : memref<16x512xf32, #tpu.memory_space<vmem>>, vector<16x512xf32>
    %1 = arith.truncf %0 : vector<16x512xf32> to vector<16x512xbf16>
    %c0_1 = arith.constant 0 : index
    %c0_2 = arith.constant 0 : index
    %2 = vector.load %arg2[%c0_1, %c0_2] : memref<512x256xbf16, #tpu.memory_space<vmem>>, vector<512x256xbf16>
    %cst = arith.constant dense<0.000000e+00> : vector<16x256xf32>
    %3 = tpu.matmul %1, %2, %cst {dimension_numbers = #tpu.dot_dimension_numbers<[1], [0], [0], [1], [0, 0, 1, 1], [], []>} : vector<16x512xbf16>, vector<512x256xbf16>, vector<16x256xf32> -> vector<16x256xf32>
    %c0_3 = arith.constant 0 : index
    %c0_4 = arith.constant 0 : index
    %4 = vector.load %arg3[%c0_3, %c0_4] : memref<1x256xf32, #tpu.memory_space<vmem>>, vector<1x256xf32>
    %5 = vector.broadcast %4 : vector<1x256xf32> to vector<16x256xf32>
    %6 = arith.addf %3, %5 : vector<16x256xf32>
    %cst_5 = arith.constant 0.000000e+00 : f32
    %7 = vector.broadcast %cst_5 : f32 to vector<16x256xf32>
    %8 = arith.maximumf %6, %7 : vector<16x256xf32>
    %9 = arith.truncf %8 : vector<16x256xf32> to vector<16x256xbf16>
    %c0_6 = arith.constant 0 : index
    %c0_7 = arith.constant 0 : index
    %10 = vector.load %arg4[%c0_6, %c0_7] : memref<256x128xbf16, #tpu.memory_space<vmem>>, vector<256x128xbf16>
    %cst_8 = arith.constant dense<0.000000e+00> : vector<16x128xf32>
    %11 = tpu.matmul %9, %10, %cst_8 {dimension_numbers = #tpu.dot_dimension_numbers<[1], [0], [0], [1], [0, 0, 1, 1], [], []>} : vector<16x256xbf16>, vector<256x128xbf16>, vector<16x128xf32> -> vector<16x128xf32>
    %c0_9 = arith.constant 0 : index
    %c0_10 = arith.constant 0 : index
    %12 = vector.load %arg5[%c0_9, %c0_10] : memref<1x128xf32, #tpu.memory_space<vmem>>, vector<1x128xf32>
    %13 = vector.broadcast %12 : vector<1x128xf32> to vector<16x128xf32>
    %14 = arith.addf %11, %13 : vector<16x128xf32>
    %15 = tpu.iota {dimensions = array<i32: 1>} : vector<16x128xi32>
    %c2_i32 = arith.constant 2 : i32
    %16 = vector.broadcast %c2_i32 : i32 to vector<16x128xi32>
    %17 = arith.cmpi slt, %15, %16 : vector<16x128xi32>
    %cst_11 = arith.constant 0xFF800000 : f32
    %18 = vector.broadcast %cst_11 : f32 to vector<16x128xf32>
    %19 = arith.select %17, %14, %18 : vector<16x128xi1>, vector<16x128xf32>
    %cst_12 = arith.constant dense<0xFF800000> : vector<16xf32>
    %20 = vector.multi_reduction <maximumf>, %19, %cst_12 [1] : vector<16x128xf32> to vector<16xf32>
    %21 = vector.shape_cast %20 : vector<16xf32> to vector<16x1xf32>
    %22 = vector.broadcast %21 : vector<16x1xf32> to vector<16x128xf32>
    %23 = arith.subf %19, %22 : vector<16x128xf32>
    %24 = math.exp %23 : vector<16x128xf32>
    %cst_13 = arith.constant 0.000000e+00 : f32
    %25 = vector.broadcast %cst_13 : f32 to vector<16x128xf32>
    %26 = arith.select %17, %24, %25 : vector<16x128xi1>, vector<16x128xf32>
    %cst_14 = arith.constant dense<0.000000e+00> : vector<16xf32>
    %27 = vector.multi_reduction <add>, %26, %cst_14 [1] : vector<16x128xf32> to vector<16xf32>
    %28 = vector.shape_cast %27 : vector<16xf32> to vector<16x1xf32>
    %29 = vector.broadcast %28 : vector<16x1xf32> to vector<16x128xf32>
    %30 = arith.divf %26, %29 : vector<16x128xf32>
    %c2_i32_15 = arith.constant 2 : i32
    %31 = vector.broadcast %c2_i32_15 : i32 to vector<16x128xi32>
    %32 = arith.cmpi eq, %15, %31 : vector<16x128xi32>
    %cst_16 = arith.constant 0.000000e+00 : f32
    %33 = vector.broadcast %cst_16 : f32 to vector<16x128xf32>
    %34 = arith.select %32, %14, %33 : vector<16x128xi1>, vector<16x128xf32>
    %35 = arith.addf %30, %34 : vector<16x128xf32>
    %c0_17 = arith.constant 0 : index
    %c0_18 = arith.constant 0 : index
    %36 = vector.load %arg6[%c0_17, %c0_18] : memref<16x128xf32, #tpu.memory_space<vmem>>, vector<16x128xf32>
    tpu.vector_store %arg6[%c0_17, %c0_18], %35 {strides = array<i32>} : memref<16x128xf32, #tpu.memory_space<vmem>>, vector<16x128xf32>,
    return
  }
  func.func @transform_0(%arg0: i32) -> (i32, i32) {
    %c0_i32 = arith.constant 0 : i32
    %c0_i32_0 = arith.constant 0 : i32
    return %arg0, %c0_i32 : i32, i32
  }
  func.func @transform_1(%arg0: i32) -> (i32, i32) {
    %c0_i32 = arith.constant 0 : i32
    %c0_i32_0 = arith.constant 0 : i32
    %c0_i32_1 = arith.constant 0 : i32
    return %c0_i32, %c0_i32_0 : i32, i32
  }
  func.func @transform_2(%arg0: i32) -> (i32, i32) {
    %c0_i32 = arith.constant 0 : i32
    %c0_i32_0 = arith.constant 0 : i32
    %c0_i32_1 = arith.constant 0 : i32
    return %c0_i32, %c0_i32_0 : i32, i32
  }
  func.func @transform_3(%arg0: i32) -> (i32, i32) {
    %c0_i32 = arith.constant 0 : i32
    %c0_i32_0 = arith.constant 0 : i32
    %c0_i32_1 = arith.constant 0 : i32
    return %c0_i32, %c0_i32_0 : i32, i32
  }
  func.func @transform_4(%arg0: i32) -> (i32, i32) {
    %c0_i32 = arith.constant 0 : i32
    %c0_i32_0 = arith.constant 0 : i32
    %c0_i32_1 = arith.constant 0 : i32
    return %c0_i32, %c0_i32_0 : i32, i32
  }
  func.func @transform_5(%arg0: i32) -> (i32, i32) {
    %c0_i32 = arith.constant 0 : i32
    %c0_i32_0 = arith.constant 0 : i32
    return %arg0, %c0_i32 : i32, i32
  }
}

</mosaic_0001>

<bundles_post_ra>
// kernel: tpu_custom_call.1
= control target key start
LH: loop header
LB: loop body
LE: loop exit
PB: predicated region body
PF: predicated region fallthrough
CT: control target
= control target key end

     0   :  { %10 = vsyncpa [#allocation3], 0  ;;  %s2101_s0 = inlined_call_operand.hbm [shape: f32[32,512], index: 0, kind: input, shape index: {}]   ;;  %s2102_s1 = inlined_call_operand.hbm [shape: bf16[512,256], index: 1, kind: input, shape index: {}]   ;;  %s2103_s2 = inlined_call_operand.hbm [shape: f32[1,256], index: 2, kind: input, shape index: {}]   ;;  %s2104_s3 = inlined_call_operand.hbm [shape: bf16[256,128], index: 3, kind: input, shape index: {}]   ;;  %s2105_s4 = inlined_call_operand.vmem [shape: f32[1,128], index: 4, kind: input, shape index: {}]   ;;  %s2106_s5 = inlined_call_operand.hbm [shape: f32[32,128], index: 5, kind: output, shape index: {}]  }
   0x1   :  { %12 = vsyncpa [#allocation3 + $0x1], 0 }
   0x2   :  { %13 = vsyncpa [#allocation6], 0 }
   0x3   :  { %14 = vsyncpa [#allocation9], 0 }
   0x4   :  { %15 = vsyncpa [#allocation4], 0 }
   0x5   :  { %17 = vsyncpa [#allocation4 + $0x1], 0  ;;  %s1907_s18 = smov 0   ;;  %s1909_s19 = smov 0  }
   0x6   :  { %s1911_s20 = smov 0   ;;  %s1913_s21 = smov 0  }
   0x7 LB: > { %s1928_s22 = sadd.s32 4294967295, %s1864_s21   ;;  %s1152_s23 = sadd.s32 4294967294, %s1864_s21   ;;  %s1864_s21 = sphi %s1913_s21, %s2117_s21   ;;  %s1860_s20 = sphi %s1911_s20, %s2116_s20   ;;  %s1856_s19 = sphi %s1909_s19, %s2115_s19   ;;  %s1852_s18 = sphi %s1907_s18, %s2114_s18  }
   0x8   : > { %p43_p0 = scmp.ne.s32.totalorder %s1856_s19, %s1852_s18  ;;  %p44_p1 = scmp.eq.s32.totalorder %s1928_s22, 0 }
   0x9   : > { %p151_p2 = scmp.eq.s32.totalorder %s1928_s22, 1  ;;  %p157_p3 = scmp.eq.s32.totalorder %s1152_s23, 1 }
   0xa   : > { %p1937_p4 = por %p44_p1, %p43_p0  ;;  %p1153_p5 = scmp.ge.s32.totalorder %s1864_s21, 1 }
   0xb   : > { %p1942_p6 = por %p157_p3, %p43_p0  ;;  %p164_p7 = scmp.lt.s32.totalorder %s1864_s21, 3 }
   0xc   : > { %s175_s28 = sshll.u32 %s2102_s1, 4  ;;  %s1866_s30 = smov [#allocation5]   ;;  %s176_s28 = int_to_ptr.hbm [resolvable:$true] %s175_s28 }
   0xd   : > { %p1950_p8 = pnand %p1153_p5, %p164_p7  ;;  %s177_s6 = sshll.u32 %s1866_s30, 4  ;;  %s178_s6 = int_to_ptr.vmem [resolvable:$true] %s177_s6 }
   0xe   : > { %s190_s10 = sshll.u32 %s2103_s2, 4  ;;  %s1867_s11 = smov 128   ;;  %s191_s10 = int_to_ptr.hbm [resolvable:$true] %s190_s10 }
   0xf   : > { %p1592_p9 = pneg %p1950_p8  ;;  %s1868_s12 = smov 8  }
  0x10   : > { %s1869_s13 = smov [#allocation7]   ;;  %s201_s17 = sshll.u32 %s2104_s3, 4  ;;  %s202_s17 = int_to_ptr.hbm [resolvable:$true] %s201_s17 }
  0x11   : > { %p1958_p10 = pnand %p1592_p9, %p44_p1  ;;  %s192_s14 = sshll.u32 %s1869_s13, 4  ;;  %s193_s14 = int_to_ptr.vmem [resolvable:$true] %s192_s14 }
  0x12   : > { %s1870_s23 = smov [#allocation8]   ;;  %s1871_s27 = smov 64  }
  0x13   : > { %1595 = dma.hbm_to_vmem [thread:$0]  (!%p1958_p10), %s176_s28, 8192, %s178_s6, [#allocation6], %s1867_s11, %s1867_s11, %s1868_s12  }
  0x14   : > { %1598 = dma.hbm_to_vmem [thread:$0]  (!%p1958_p10), %s191_s10, 32, %s193_s14, [#allocation6]  }
  0x15   : > { %s203_s26 = sshll.u32 %s1870_s23, 4  ;;  %s1872_s28 = smov 4   ;;  %s204_s26 = int_to_ptr.vmem [resolvable:$true] %s203_s26 }
  0x16   : > { %1601 = dma.hbm_to_vmem [thread:$0]  (!%p1958_p10), %s202_s17, 2048, %s204_s26, [#allocation9], %s1871_s27, %s1871_s27, %s1872_s28  }
  0x17   : > { %s1976_s30 = sadd.s32 1, %s1864_s21   ;;  %s30_s8 = sadd.s32 1, %s1860_s20 }
  0x18   : > { %s27_s6 = ssub.s32 %s1864_s21, %s1976_s30  ;;  %p37_p13 = scmp.ne.s32.totalorder %s1860_s20, %s1856_s19 }
  0x19   : > { %p28_p12 = scmp.eq.s32.totalorder %s27_s6, 0  ;;  %p38_p0 = scmp.eq.s32.totalorder %s1864_s21, 0 }
  0x1a   : > { %p1613_p3 = scmp.lt.s32.totalorder %s1864_s21, 2  ;;  %p1990_p7 = por %p151_p2, %p37_p13 }
  0x1b   : > { %s1986_s9 = scalar_select %p28_p12, %s1860_s20, %s30_s8  }
  0x1c   : > { %p39_p5 = por %p38_p0, %p37_p13  ;;  %s220_s7 = sand.u32 1, %s1860_s20  }
  0x1d   : > { %s1494_s11 = sshll.u32 %s1864_s21, 6  ;;  %s1158_s12 = sshll.u32 %s220_s7, 6 }
  0x1e   : > { %s230_s15 = scalar_lea.hbm %s2101_s0, %s1494_s11  ;;  %s224_s17 = scalar_lea.vmem [#allocation2], %s1158_s12 }
  0x1f   : > { %s231_s16 = sshll.u32 %s230_s15, 4  ;;  %s233_s23 = sshll.u32 %s224_s17, 4  ;;  %s232_s16 = int_to_ptr.hbm [resolvable:$true] %s231_s16  ;;  %s234_s23 = int_to_ptr.vmem [resolvable:$true] %s233_s23 }
  0x20   : > { %p2001_p9 = pnand %p1613_p3, %p39_p5  ;;  %s221_s27 = scalar_lea.sflag [#allocation3], %s220_s7 }
  0x21   : > { %s1760_s28 = sshra.s32 %s232_s16, 4  ;;  %s1767_s12 = scalar_lea.hbm %s2101_s0, 128  ;;  %s1761_s28 = int_to_ptr.hbm [resolvable:$true] %s1760_s28 }
  0x22   : > { %s1762_s6 = scalar_lea.hbm %s1761_s28, 64  ;;  %p1764_p10 = pneg %p2001_p9 }
  0x23   : > { %p1763_p2 = scmp.ne.s32.totalorder %s1761_s28, %s1762_s6  ;;  %p1768_p0 = scmp.lt.s32.totalorder %s1761_s28, %s2101_s0 }
  0x24   : > { %p1769_p3 = scmp.lt.s32.totalorder %s1767_s12, %s1762_s6 }
  0x25   : > { %p1765_p12 = pnand %p1764_p10, %p1763_p2 }
  0x26   : > { %p1770_p5 = por %p1769_p3, %p1768_p0 }
  0x27   : > { %p1766_p13 = pneg %p1765_p12 }
  0x29   : > { %p1771_p11 = pnand %p1770_p5, %p1766_p13 }
  0x2b   : > { %1774 = shalt.err (!%p1771_p11)
}
  0x2c   : > { %s1873_s7 = smov 512   ;;  %s1874_s15 = smov 32  }
  0x2d   : > { %1605 = dma.hbm_to_vmem [thread:$0]  (!%p2001_p9), %s232_s16, 1024, %s234_s23, %s221_s27, %s1873_s7, %s1873_s7, %s1874_s15  }
  0x2e   : > { %245 = sbr.rel (%p1950_p8) target bundleno = 678 (0x2a6), region = 40  ;;  %s2018_s17 = sand.u32 (!%p1950_p8), 1, %s1856_s19  }
  0x2f   : > { %s1163_s8 = sshll.u32 (!%p1950_p8), %s2018_s17, 6  ;;  %s248_s28 = scalar_lea.sflag (!%p1950_p8), [#allocation3], %s2018_s17 }
  0x30   : > { %s2022_s6 = scalar_lea.vmem (!%p1950_p8), [#allocation2], %s1163_s8 }
  0x33   : > { %1835 = dma.done.wait (%p1937_p4), %s248_s28, 1024  }
  0x34   : > { %1837 = vsyncadd (%p1937_p4), %s248_s28, 4294966272 }
  0x35   : > { %1839 = dma.done.wait (%p44_p1), [#allocation6], 8224  }
  0x36   : > { %1841 = vsyncadd (%p44_p1), [#allocation6], 4294959072 }
  0x37   : > { %1843 = dma.done.wait (%p44_p1), [#allocation9], 2048  }
  0x38   : > { %1845 = vsyncadd (%p44_p1), [#allocation9], 4294965248  ;;  %v1226_v0 = vld [vmem:[#allocation5 + $0x70] sm:$0xf]  ;;  %v1510_v1 = vld [vmem:[#allocation5 + $0x74] sm:$0xf0] }
  0x39   : > { %v1290_v2 = vld [vmem:[#allocation5 + $0xf0] sm:$0xf]  ;;  %v1227_v3 = vor.u32 %v1510_v1, %v1226_v0  ;;  %v1526_v4 = vld [vmem:[#allocation5 + $0xf4] sm:$0xf0]  ;;  %v1218_v11 = vld [vmem:[#allocation5 + $0x60] sm:$0xf] }
  0x3a   : > { %v1354_v5 = vld [vmem:[#allocation5 + $0x170] sm:$0xf]  ;;  %v1542_v6 = vld [vmem:[#allocation5 + $0x174] sm:$0xf0]  ;;  %v1291_v7 = vor.u32 %v1526_v4, %v1290_v2  ;;  %v1508_v13 = vld [vmem:[#allocation5 + $0x64] sm:$0xf0] }
  0x3b   : > { %v1355_v8 = vor.u32 %v1542_v6, %v1354_v5  ;;  %v1418_v9 = vld [vmem:[#allocation5 + $0x1f0] sm:$0xf]  ;;  %v1558_v10 = vld [vmem:[#allocation5 + $0x1f4] sm:$0xf0]  ;;  %698 = vmatpush.bf16.msra.mxu0 %v1227_v3  ;;  %v1282_v14 = vld [vmem:[#allocation5 + $0xe0] sm:$0xf]  ;;  %v1219_v16 = vor.u32 %v1508_v13, %v1218_v11 }
  0x3c   : > { %v1419_v12 = vor.u32 %v1558_v10, %v1418_v9  ;;  %v1524_v15 = vld [vmem:[#allocation5 + $0xe4] sm:$0xf0]  ;;  %712 = vmatpush.bf16.msra.mxu1 %v1291_v7  ;;  %v1346_v18 = vld [vmem:[#allocation5 + $0x160] sm:$0xf]  ;;  %v1210_v23 = vld [vmem:[#allocation5 + $0x50] sm:$0xf] }
  0x3d   : > { %726 = vmatpush.bf16.msra.mxu2 %v1355_v8  ;;  %v1283_v17 = vor.u32 %v1524_v15, %v1282_v14  ;;  %v1540_v19 = vld [vmem:[#allocation5 + $0x164] sm:$0xf0]  ;;  %v1410_v20 = vld [vmem:[#allocation5 + $0x1e0] sm:$0xf]  ;;  %v1506_v24 = vld [vmem:[#allocation5 + $0x54] sm:$0xf0] }
  0x3e   : > { %740 = vmatpush.bf16.msra.mxu3 %v1419_v12  ;;  %v1347_v21 = vor.u32 %v1540_v19, %v1346_v18  ;;  %v1556_v22 = vld [vmem:[#allocation5 + $0x1e4] sm:$0xf0]  ;;  %v1274_v26 = vld [vmem:[#allocation5 + $0xd0] sm:$0xf]  ;;  %v1522_v27 = vld [vmem:[#allocation5 + $0xd4] sm:$0xf0]  ;;  %v1211_v29 = vor.u32 %v1506_v24, %v1210_v23 }
  0x3f   : > { %v1411_v25 = vor.u32 %v1556_v22, %v1410_v20  ;;  %v1338_v28 = vld [vmem:[#allocation5 + $0x150] sm:$0xf]  ;;  %699 = vmatpush.bf16.msra.mxu0 %v1219_v16  ;;  %v1538_v30 = vld [vmem:[#allocation5 + $0x154] sm:$0xf0]  ;;  %v1275_v33 = vor.u32 %v1522_v27, %v1274_v26  ;;  %v1202_v35 = vld [vmem:[#allocation5 + $0x40] sm:$0xf] }
  0x40   : > { %v1402_v31 = vld [vmem:[#allocation5 + $0x1d0] sm:$0xf]  ;;  %v1554_v32 = vld [vmem:[#allocation5 + $0x1d4] sm:$0xf0]  ;;  %713 = vmatpush.bf16.msra.mxu1 %v1283_v17  ;;  %v1339_v34 = vor.u32 %v1538_v30, %v1338_v28  ;;  %v1504_v36 = vld [vmem:[#allocation5 + $0x44] sm:$0xf0] }
  0x41   : > { %727 = vmatpush.bf16.msra.mxu2 %v1347_v21  ;;  %v1266_v37 = vld [vmem:[#allocation5 + $0xc0] sm:$0xf]  ;;  %v1403_v38 = vor.u32 %v1554_v32, %v1402_v31  ;;  %v1520_v39 = vld [vmem:[#allocation5 + $0xc4] sm:$0xf0]  ;;  %v1203_v44 = vor.u32 %v1504_v36, %v1202_v35  ;;  %v1194_v47 = vld [vmem:[#allocation5 + $0x30] sm:$0xf] }
  0x42   : > { %741 = vmatpush.bf16.msra.mxu3 %v1411_v25  ;;  %v1330_v40 = vld [vmem:[#allocation5 + $0x140] sm:$0xf]  ;;  %v1536_v41 = vld [vmem:[#allocation5 + $0x144] sm:$0xf0]  ;;  %v1267_v45 = vor.u32 %v1520_v39, %v1266_v37  ;;  %v1502_v48 = vld [vmem:[#allocation5 + $0x34] sm:$0xf0] }
  0x43   : > { %v1394_v42 = vld [vmem:[#allocation5 + $0x1c0] sm:$0xf]  ;;  %v1552_v43 = vld [vmem:[#allocation5 + $0x1c4] sm:$0xf0]  ;;  %700 = vmatpush.bf16.msra.mxu0 %v1211_v29  ;;  %v1331_v46 = vor.u32 %v1536_v41, %v1330_v40  ;;  %v1258_v49 = vld [vmem:[#allocation5 + $0xb0] sm:$0xf]  ;;  %v1195_v56 = vor.u32 %v1502_v48, %v1194_v47 }
  0x44   : > { %714 = vmatpush.bf16.msra.mxu1 %v1275_v33  ;;  %v1395_v50 = vor.u32 %v1552_v43, %v1394_v42  ;;  %v1518_v51 = vld [vmem:[#allocation5 + $0xb4] sm:$0xf0]  ;;  %v1322_v52 = vld [vmem:[#allocation5 + $0x130] sm:$0xf]  ;;  %v1186_v59 = vld [vmem:[#allocation5 + $0x20] sm:$0xf] }
  0x45   : > { %728 = vmatpush.bf16.msra.mxu2 %v1339_v34  ;;  %v1534_v53 = vld [vmem:[#allocation5 + $0x134] sm:$0xf0]  ;;  %v1386_v54 = vld [vmem:[#allocation5 + $0x1b0] sm:$0xf]  ;;  %v1259_v57 = vor.u32 %v1518_v51, %v1258_v49  ;;  %v1500_v60 = vld [vmem:[#allocation5 + $0x24] sm:$0xf0] }
  0x46   : > { %742 = vmatpush.bf16.msra.mxu3 %v1403_v38  ;;  %v1550_v55 = vld [vmem:[#allocation5 + $0x1b4] sm:$0xf0]  ;;  %v1323_v58 = vor.u32 %v1534_v53, %v1322_v52  ;;  %v1250_v61 = vld [vmem:[#allocation5 + $0xa0] sm:$0xf]  ;;  %v1516_v63 = vld [vmem:[#allocation5 + $0xa4] sm:$0xf0]  ;;  %v1187_v4 = vor.u32 %v1500_v60, %v1186_v59 }
  0x47   : > { %701 = vmatpush.bf16.msra.mxu0 %v1203_v44  ;;  %v1387_v62 = vor.u32 %v1550_v55, %v1386_v54  ;;  %v1314_v0 = vld [vmem:[#allocation5 + $0x120] sm:$0xf]  ;;  %v1532_v1 = vld [vmem:[#allocation5 + $0x124] sm:$0xf0]  ;;  %v1178_v5 = vld [vmem:[#allocation5 + $0x10] sm:$0xf]  ;;  %v1251_v6 = vor.u32 %v1516_v63, %v1250_v61 }
  0x48   : > { %715 = vmatpush.bf16.msra.mxu1 %v1267_v45  ;;  %v1378_v2 = vld [vmem:[#allocation5 + $0x1a0] sm:$0xf]  ;;  %v1548_v3 = vld [vmem:[#allocation5 + $0x1a4] sm:$0xf0]  ;;  %v1315_v7 = vor.u32 %v1532_v1, %v1314_v0  ;;  %v1498_v8 = vld [vmem:[#allocation5 + $0x14] sm:$0xf0] }
  0x49   : > { %729 = vmatpush.bf16.msra.mxu2 %v1331_v46  ;;  %v1242_v9 = vld [vmem:[#allocation5 + $0x90] sm:$0xf]  ;;  %v1514_v10 = vld [vmem:[#allocation5 + $0x94] sm:$0xf0]  ;;  %v1379_v11 = vor.u32 %v1548_v3, %v1378_v2  ;;  %v1170_v16 = vld [vmem:[#allocation5] sm:$0xf]  ;;  %v1179_v18 = vor.u32 %v1498_v8, %v1178_v5 }
  0x4a   : > { %743 = vmatpush.bf16.msra.mxu3 %v1395_v50  ;;  %v1306_v12 = vld [vmem:[#allocation5 + $0x110] sm:$0xf]  ;;  %v1530_v13 = vld [vmem:[#allocation5 + $0x114] sm:$0xf0]  ;;  %v1496_v17 = vld [vmem:[#allocation5 + $0x4] sm:$0xf0]  ;;  %v1243_v23 = vor.u32 %v1514_v10, %v1242_v9 }
  0x4b   : > { %702 = vmatpush.bf16.msra.mxu0 %v1195_v56  ;;  %v1370_v14 = vld [vmem:[#allocation5 + $0x190] sm:$0xf]  ;;  %v1546_v15 = vld [vmem:[#allocation5 + $0x194] sm:$0xf0]  ;;  %v1234_v19 = vld [vmem:[#allocation5 + $0x80] sm:$0xf]  ;;  %v1307_v24 = vor.u32 %v1530_v13, %v1306_v12  ;;  %v1171_v35 = vor.u32 %v1496_v17, %v1170_v16 }
  0x4c   : > { %716 = vmatpush.bf16.msra.mxu1 %v1259_v57  ;;  %v1512_v20 = vld [vmem:[#allocation5 + $0x84] sm:$0xf0]  ;;  %v1298_v21 = vld [vmem:[#allocation5 + $0x100] sm:$0xf]  ;;  %v1509_v27 = vld [vmem:[#allocation5 + $0x74] sm:$0xf]  ;;  %v1371_v28 = vor.u32 %v1546_v15, %v1370_v14 }
  0x4d   : > { %730 = vmatpush.bf16.msra.mxu2 %v1323_v58  ;;  %v1528_v22 = vld [vmem:[#allocation5 + $0x104] sm:$0xf0]  ;;  %v1362_v25 = vld [vmem:[#allocation5 + $0x180] sm:$0xf]  ;;  %v1228_v29 = vld [vmem:[#allocation5 + $0x78] sm:$0xf0]  ;;  %v1235_v39 = vor.u32 %v1512_v20, %v1234_v19 }
  0x4e   : > { %744 = vmatpush.bf16.msra.mxu3 %v1387_v62  ;;  %v1544_v26 = vld [vmem:[#allocation5 + $0x184] sm:$0xf0]  ;;  %v1525_v30 = vld [vmem:[#allocation5 + $0xf4] sm:$0xf]  ;;  %v1292_v31 = vld [vmem:[#allocation5 + $0xf8] sm:$0xf0]  ;;  %v1299_v40 = vor.u32 %v1528_v22, %v1298_v21  ;;  %v1231_v45 = vor.u32 %v1509_v27, %v1228_v29 }
  0x4f   : > { %703 = vmatpush.bf16.msra.mxu0 %v1187_v4  ;;  %v1541_v32 = vld [vmem:[#allocation5 + $0x174] sm:$0xf]  ;;  %v1356_v33 = vld [vmem:[#allocation5 + $0x178] sm:$0xf0]  ;;  %v296_v41 = vld [vmem:[%s2022_s6] sm:$0xff]  ;;  %v1363_v44 = vor.u32 %v1544_v26, %v1362_v25  ;;  %v1295_v49 = vor.u32 %v1525_v30, %v1292_v31  ;;  %s1167_s16 = sshll.u32 %s2018_s17, 4 }
  0x50   : > { %717 = vmatpush.bf16.msra.mxu1 %v1251_v6  ;;  %v1557_v34 = vld [vmem:[#allocation5 + $0x1f4] sm:$0xf]  ;;  %v1420_v36 = vld [vmem:[#allocation5 + $0x1f8] sm:$0xf0]  ;;  %v300_v42 = vld [vmem:[%s2022_s6 + $0x20] sm:$0xff]  ;;  %v1359_v50 = vor.u32 %v1541_v32, %v1356_v33  ;;  %s1575_s23 = sshll.u32 %s1928_s22, 4 }
  0x51   : > { %731 = vmatpush.bf16.msra.mxu2 %v1315_v7  ;;  %v298_v37 = vld [vmem:[%s2022_s6 + $0x10] sm:$0xff]  ;;  %v299_v43 = vld [vmem:[%s2022_s6 + $0x18] sm:$0xff]  ;;  %v1507_v47 = vld [vmem:[#allocation5 + $0x64] sm:$0xf]  ;;  %v1423_v54 = vor.u32 %v1557_v34, %v1420_v36  ;;  %v2046_v59 = vpack.c.bf16 %v300_v42, %v296_v41  ;;  %s1046_s11 = scalar_lea.hbm %s2106_s5, %s1575_s23  ;;  %s293_s12 = scalar_lea.vmem [#allocation10], %s1167_s16 }
  0x52   : > { %745 = vmatpush.bf16.msra.mxu3 %v1379_v11  ;;  %v302_v38 = vld [vmem:[%s2022_s6 + $0x30] sm:$0xff]  ;;  %v303_v46 = vld [vmem:[%s2022_s6 + $0x38] sm:$0xff]  ;;  %v1220_v48 = vld [vmem:[#allocation5 + $0x68] sm:$0xf0]  ;;  %s1047_s22 = sshll.u32 %s293_s12, 4  ;;  %s1049_s13 = sshll.u32 %s1046_s11, 4  ;;  %s1048_s22 = int_to_ptr.vmem [resolvable:$true] %s1047_s22  ;;  %s1050_s13 = int_to_ptr.hbm [resolvable:$true] %s1049_s13 }
  0x53   : > { %704 = vmatpush.bf16.msra.mxu0 %v1179_v18  ;;  %v1523_v51 = vld [vmem:[#allocation5 + $0xe4] sm:$0xf]  ;;  %v297_v52 = vld [vmem:[%s2022_s6 + $0x8] sm:$0xff]  ;;  %v2044_v55 = vpack.c.bf16 %v302_v38, %v298_v37  ;;  %v2048_v60 = vpack.c.bf16 %v303_v46, %v299_v43  ;;  %v1223_v63 = vor.u32 %v1507_v47, %v1220_v48  ;;  %v1505_v3 = vld [vmem:[#allocation5 + $0x54] sm:$0xf]  ;;  %s1035_s14 = scalar_lea.sflag [#allocation4], %s2018_s17 }
  0x54   : > { %718 = vmatpush.bf16.msra.mxu1 %v1243_v23  ;;  %v301_v53 = vld [vmem:[%s2022_s6 + $0x28] sm:$0xff]  ;;  %v1539_v57 = vld [vmem:[#allocation5 + $0x164] sm:$0xf]  ;;  %v1212_v4 = vld [vmem:[#allocation5 + $0x58] sm:$0xf0]  ;;  %s1804_s7 = sshra.s32 %s1050_s13, 4  ;;  %s1805_s7 = int_to_ptr.hbm [resolvable:$true] %s1804_s7 }
  0x55   : > { %732 = vmatpush.bf16.msra.mxu2 %v1307_v24  ;;  %v1284_v56 = vld [vmem:[#allocation5 + $0xe8] sm:$0xf0]  ;;  %v1555_v61 = vld [vmem:[#allocation5 + $0x1e4] sm:$0xf]  ;;  %v2050_v0 = vpack.c.bf16 %v301_v53, %v297_v52  ;;  %v1521_v5 = vld [vmem:[#allocation5 + $0xd4] sm:$0xf]  ;;  %v1215_v12 = vor.u32 %v1505_v3, %v1212_v4  ;;  %p1811_p11 = scmp.lt.s32.totalorder %s1805_s7, %s2106_s5 }
  0x56   : > { %746 = vmatpush.bf16.msra.mxu3 %v1371_v28  ;;  %v1348_v58 = vld [vmem:[#allocation5 + $0x168] sm:$0xf0]  ;;  %v1287_v1 = vor.u32 %v1523_v51, %v1284_v56  ;;  %v1276_v7 = vld [vmem:[#allocation5 + $0xd8] sm:$0xf0]  ;;  %v1537_v8 = vld [vmem:[#allocation5 + $0x154] sm:$0xf] }
  0x57   : > { %705 = vmatpush.bf16.msra.mxu0 %v1171_v35  ;;  %v1412_v62 = vld [vmem:[#allocation5 + $0x1e8] sm:$0xf0]  ;;  %v1351_v2 = vor.u32 %v1539_v57, %v1348_v58  ;;  %v1340_v9 = vld [vmem:[#allocation5 + $0x158] sm:$0xf0]  ;;  %v1553_v10 = vld [vmem:[#allocation5 + $0x1d4] sm:$0xf]  ;;  %v1279_v13 = vor.u32 %v1521_v5, %v1276_v7 }
  0x58   : > { %719 = vmatpush.bf16.msra.mxu1 %v1235_v39  ;;  %v1415_v6 = vor.u32 %v1555_v61, %v1412_v62  ;;  %v1404_v11 = vld [vmem:[#allocation5 + $0x1d8] sm:$0xf0]  ;;  %v1343_v14 = vor.u32 %v1537_v8, %v1340_v9  ;;  %v1503_v15 = vld [vmem:[#allocation5 + $0x44] sm:$0xf]  ;;  %v1204_v16 = vld [vmem:[#allocation5 + $0x48] sm:$0xf0] }
  0x59   : > { %733 = vmatpush.bf16.msra.mxu2 %v1299_v40  ;;  %v1519_v17 = vld [vmem:[#allocation5 + $0xc4] sm:$0xf]  ;;  %v1407_v18 = vor.u32 %v1553_v10, %v1404_v11  ;;  %v1268_v19 = vld [vmem:[#allocation5 + $0xc8] sm:$0xf0]  ;;  %v1207_v24 = vor.u32 %v1503_v15, %v1204_v16  ;;  %v1501_v27 = vld [vmem:[#allocation5 + $0x34] sm:$0xf] }
  0x5a   : > { %747 = vmatpush.bf16.msra.mxu3 %v1363_v44  ;;  %706 = vmatmul.bf16.vlgmr.msra.gmra.mxu0 %v2046_v59  ;;  %v1535_v20 = vld [vmem:[#allocation5 + $0x144] sm:$0xf]  ;;  %v1332_v21 = vld [vmem:[#allocation5 + $0x148] sm:$0xf0]  ;;  %v1271_v25 = vor.u32 %v1519_v17, %v1268_v19  ;;  %v1196_v28 = vld [vmem:[#allocation5 + $0x38] sm:$0xf0] }
  0x5b   : > { %754 = vmatpush.bf16.msrb.mxu0 %v1231_v45  ;;  %720 = vmatmul.bf16.vlgmr.msra.gmra.mxu1 %v2050_v0  ;;  %v1551_v22 = vld [vmem:[#allocation5 + $0x1c4] sm:$0xf]  ;;  %v1396_v23 = vld [vmem:[#allocation5 + $0x1c8] sm:$0xf0]  ;;  %v1335_v26 = vor.u32 %v1535_v20, %v1332_v21  ;;  %v1517_v29 = vld [vmem:[#allocation5 + $0xb4] sm:$0xf]  ;;  %v1199_v36 = vor.u32 %v1501_v27, %v1196_v28 }
  0x5c   : > { %768 = vmatpush.bf16.msrb.mxu1 %v1295_v49  ;;  %734 = vmatmul.bf16.vlgmr.msra.gmra.mxu2 %v2044_v55  ;;  %v1399_v30 = vor.u32 %v1551_v22, %v1396_v23  ;;  %v1260_v31 = vld [vmem:[#allocation5 + $0xb8] sm:$0xf0]  ;;  %v1533_v32 = vld [vmem:[#allocation5 + $0x134] sm:$0xf]  ;;  %v1499_v37 = vld [vmem:[#allocation5 + $0x24] sm:$0xf] }
  0x5d   : > { %782 = vmatpush.bf16.msrb.mxu2 %v1359_v50  ;;  %748 = vmatmul.bf16.vlgmr.msra.gmra.mxu3 %v2048_v60  ;;  %v1324_v33 = vld [vmem:[#allocation5 + $0x138] sm:$0xf0]  ;;  %v1549_v34 = vld [vmem:[#allocation5 + $0x1b4] sm:$0xf]  ;;  %v1263_v38 = vor.u32 %v1517_v29, %v1260_v31  ;;  %v1188_v40 = vld [vmem:[#allocation5 + $0x28] sm:$0xf0] }
  0x5e   : > { %796 = vmatpush.bf16.msrb.mxu3 %v1423_v54  ;;  %v1388_v35 = vld [vmem:[#allocation5 + $0x1b8] sm:$0xf0]  ;;  %v1327_v39 = vor.u32 %v1533_v32, %v1324_v33  ;;  %v1515_v41 = vld [vmem:[#allocation5 + $0xa4] sm:$0xf]  ;;  %v1252_v43 = vld [vmem:[#allocation5 + $0xa8] sm:$0xf0]  ;;  %v1191_v48 = vor.u32 %v1499_v37, %v1188_v40 }
  0x5f   : > { %755 = vmatpush.bf16.msrb.mxu0 %v1223_v63  ;;  %v1391_v42 = vor.u32 %v1549_v34, %v1388_v35  ;;  %v1531_v44 = vld [vmem:[#allocation5 + $0x124] sm:$0xf]  ;;  %v1316_v45 = vld [vmem:[#allocation5 + $0x128] sm:$0xf0]  ;;  %v1255_v49 = vor.u32 %v1515_v41, %v1252_v43  ;;  %v1497_v51 = vld [vmem:[#allocation5 + $0x14] sm:$0xf] }
  0x60   : > { %769 = vmatpush.bf16.msrb.mxu1 %v1287_v1  ;;  %v1547_v46 = vld [vmem:[#allocation5 + $0x1a4] sm:$0xf]  ;;  %v1380_v47 = vld [vmem:[#allocation5 + $0x1a8] sm:$0xf0]  ;;  %v1319_v50 = vor.u32 %v1531_v44, %v1316_v45  ;;  %v1180_v52 = vld [vmem:[#allocation5 + $0x18] sm:$0xf0] }
  0x61   : > { %783 = vmatpush.bf16.msrb.mxu2 %v1351_v2  ;;  %v1513_v53 = vld [vmem:[#allocation5 + $0x94] sm:$0xf]  ;;  %v1383_v54 = vor.u32 %v1547_v46, %v1380_v47  ;;  %v1244_v56 = vld [vmem:[#allocation5 + $0x98] sm:$0xf0]  ;;  %v1183_v63 = vor.u32 %v1497_v51, %v1180_v52  ;;  %v1495_v3 = vld [vmem:[#allocation5 + $0x4] sm:$0xf] }
  0x62   : > { %797 = vmatpush.bf16.msrb.mxu3 %v1415_v6  ;;  %v1529_v57 = vld [vmem:[#allocation5 + $0x114] sm:$0xf]  ;;  %v1308_v58 = vld [vmem:[#allocation5 + $0x118] sm:$0xf0]  ;;  %v1247_v1 = vor.u32 %v1513_v53, %v1244_v56  ;;  %v1172_v4 = vld [vmem:[#allocation5 + $0x8] sm:$0xf0] }
  0x63   : > { %756 = vmatpush.bf16.msrb.mxu0 %v1215_v12  ;;  %v1545_v61 = vld [vmem:[#allocation5 + $0x194] sm:$0xf]  ;;  %v1372_v62 = vld [vmem:[#allocation5 + $0x198] sm:$0xf0]  ;;  %v1311_v2 = vor.u32 %v1529_v57, %v1308_v58  ;;  %v1511_v5 = vld [vmem:[#allocation5 + $0x84] sm:$0xf]  ;;  %v1175_v12 = vor.u32 %v1495_v3, %v1172_v4 }
  0x64   : > { %770 = vmatpush.bf16.msrb.mxu1 %v1279_v13  ;;  %v1375_v6 = vor.u32 %v1545_v61, %v1372_v62  ;;  %v1236_v7 = vld [vmem:[#allocation5 + $0x88] sm:$0xf0]  ;;  %v1527_v8 = vld [vmem:[#allocation5 + $0x104] sm:$0xf]  ;;  %v1566_v16 = vld [vmem:[#allocation8 + $0x38] sm:$0xff]  ;;  %s1806_s15 = scalar_lea.hbm %s1805_s7, 16 }
  0x65   : > { %784 = vmatpush.bf16.msrb.mxu2 %v1343_v14  ;;  %v1300_v9 = vld [vmem:[#allocation5 + $0x108] sm:$0xf0]  ;;  %v1543_v10 = vld [vmem:[#allocation5 + $0x184] sm:$0xf]  ;;  %v1239_v13 = vor.u32 %v1511_v5, %v1236_v7  ;;  %v1565_v17 = vld [vmem:[#allocation8 + $0x30] sm:$0xff]  ;;  %p1807_p1 = scmp.ne.s32.totalorder %s1805_s7, %s1806_s15  ;;  %s1810_s6 = scalar_lea.hbm %s2106_s5, 32 }
  0x66   : > { %798 = vmatpush.bf16.msrb.mxu3 %v1407_v18  ;;  %v1364_v11 = vld [vmem:[#allocation5 + $0x188] sm:$0xf0]  ;;  %v1303_v14 = vor.u32 %v1527_v8, %v1300_v9  ;;  %v1563_v19 = vld [vmem:[#allocation8 + $0x20] sm:$0xff]  ;;  %v1562_v20 = vld [vmem:[#allocation8 + $0x18] sm:$0xff]  ;;  %v976_v9 = vlaneseq  ;;  %p1812_p9 = scmp.lt.s32.totalorder %s1810_s6, %s1806_s15 }
  0x67   : > { %757 = vmatpush.bf16.msrb.mxu0 %v1207_v24  ;;  %v1367_v15 = vor.u32 %v1543_v10, %v1364_v11  ;;  %v1564_v18 = vld [vmem:[#allocation8 + $0x28] sm:$0xff]  ;;  %v1561_v21 = vld [vmem:[#allocation8 + $0x10] sm:$0xff]  ;;  %v1559_v23 = vld [vmem:[#allocation8] sm:$0xff]  ;;  %p1808_p4 = pnand %p1807_p1, %p1990_p7 }
  0x68   : > { %771 = vmatpush.bf16.msrb.mxu1 %v1271_v25  ;;  %v1560_v22 = vld [vmem:[#allocation8 + $0x8] sm:$0xff]  ;;  %v1574_v24 = vld [vmem:[#allocation8 + $0x78] sm:$0xff]  ;;  %v1571_v25 = vld [vmem:[#allocation8 + $0x60] sm:$0xff]  ;;  %p1813_p2 = por %p1812_p9, %p1811_p11 }
  0x69   : > { %785 = vmatpush.bf16.msrb.mxu2 %v1335_v26  ;;  %v1569_v35 = vld [vmem:[#allocation8 + $0x50] sm:$0xff]  ;;  %v1568_v40 = vld [vmem:[#allocation8 + $0x48] sm:$0xff]  ;;  %v1567_v46 = vld [vmem:[#allocation8 + $0x40] sm:$0xff]  ;;  %p1809_p8 = pneg %p1808_p4 }
  0x6a   : > { %799 = vmatpush.bf16.msrb.mxu3 %v1399_v30  ;;  %v1570_v30 = vld [vmem:[#allocation8 + $0x58] sm:$0xff] }
  0x6b   : > { %758 = vmatpush.bf16.msrb.mxu0 %v1199_v36  ;;  %v1661_v11 = vld [vmem:[%s2105_s4] ss:$0 sm:$0xff]  ;;  %p1814_p10 = pnand %p1813_p2, %p1809_p8 }
  0x6c   : > { %772 = vmatpush.bf16.msrb.mxu1 %v1263_v38 }
  0x6d   : > { %786 = vmatpush.bf16.msrb.mxu2 %v1327_v39 }
  0x6e   : > { %800 = vmatpush.bf16.msrb.mxu3 %v1391_v42 }
  0x6f   : > { %759 = vmatpush.bf16.msrb.mxu0 %v1191_v48 }
  0x70   : > { %773 = vmatpush.bf16.msrb.mxu1 %v1255_v49 }
  0x71   : > { %787 = vmatpush.bf16.msrb.mxu2 %v1319_v50 }
  0x72   : > { %801 = vmatpush.bf16.msrb.mxu3 %v1383_v54 }
  0x73   : > { %760 = vmatpush.bf16.msrb.mxu0 %v1183_v63 }
  0x74   : > { %774 = vmatpush.bf16.msrb.mxu1 %v1247_v1 }
  0x75   : > { %788 = vmatpush.bf16.msrb.mxu2 %v1311_v2 }
  0x76   : > { %802 = vmatpush.bf16.msrb.mxu3 %v1375_v6 }
  0x77   : > { %761 = vmatpush.bf16.msrb.mxu0 %v1175_v12  ;;  %v977_v12 = vand.u32 127, %v976_v9 }
  0x78   : > { %775 = vmatpush.bf16.msrb.mxu1 %v1239_v13 }
  0x79   : > { %789 = vmatpush.bf16.msrb.mxu2 %v1303_v14  ;;  %vm1027_vm0 = vcmp.eq.s32.totalorder %v977_v12, 2  ;;  %vm978_vm1 = vcmp.lt.s32.totalorder %v977_v12, 2 }
  0x7a   : > { %803 = vmatpush.bf16.msrb.mxu3 %v1367_v15  ;;  %762 = vmatmul.bf16.vlgmr.msrb.gmra.mxu0 %v2046_v59  ;;  %v1573_v59 = vld [vmem:[#allocation8 + $0x70] sm:$0xff] }
  0x7b   : > { %948 = vmatpush.bf16.msra.mxu0 %v1566_v16  ;;  %776 = vmatmul.bf16.vlgmr.msrb.gmra.mxu1 %v2050_v0  ;;  %v372_v0 = vld [vmem:[#allocation7] sm:$0x3] }
  0x7c   : > { %790 = vmatmul.bf16.vlgmr.msrb.gmra.mxu2 %v2044_v55  ;;  %962 = vmatpush.bf16.msra.mxu1 %v1574_v24  ;;  %v1572_v55 = vld [vmem:[#allocation8 + $0x68] sm:$0xff]  ;;  %v375_v49 = vperm.slane %v372_v0, 1 }
  0x7d   : > { %804 = vmatmul.bf16.vlgmr.msrb.gmra.mxu3 %v2048_v60  ;;  %v374_v60 = vperm.slane %v372_v0, 0 }
  0x7f   : > { %949 = vmatpush.bf16.msra.mxu0 %v1565_v17 }
  0x80   : > { %963 = vmatpush.bf16.msra.mxu1 %v1573_v59 }
  0x83   : > { %950 = vmatpush.bf16.msra.mxu0 %v1564_v18 }
  0x84   : > { %964 = vmatpush.bf16.msra.mxu1 %v1572_v55 }
  0x87   : > { %951 = vmatpush.bf16.msra.mxu0 %v1563_v19 }
  0x88   : > { %965 = vmatpush.bf16.msra.mxu1 %v1571_v25 }
  0x8b   : > { %952 = vmatpush.bf16.msra.mxu0 %v1562_v20 }
  0x8c   : > { %966 = vmatpush.bf16.msra.mxu1 %v1570_v30 }
  0x8f   : > { %953 = vmatpush.bf16.msra.mxu0 %v1561_v21 }
  0x90   : > { %967 = vmatpush.bf16.msra.mxu1 %v1569_v35 }
  0x93   : > { %954 = vmatpush.bf16.msra.mxu0 %v1560_v22 }
  0x94   : > { %968 = vmatpush.bf16.msra.mxu1 %v1568_v40 }
  0x97   : > { %955 = vmatpush.bf16.msra.mxu0 %v1559_v23 }
  0x98   : > { %969 = vmatpush.bf16.msra.mxu1 %v1567_v46 }
  0xd7   : > { %v707_v26 = vpop.f32.mrf.mxu0 }
  0xd8   : > { %v708_v27 = vadd.f32 %v707_v26, %v374_v60  ;;  %v721_v28 = vpop.f32.mrf.mxu1 }
  0xda   : > { %v722_v29 = vadd.f32 %v721_v28, %v708_v27 }
  0xdf   : > { %v735_v31 = vpop.f32.mrf.mxu2  ;;  %v709_v34 = vpop.f32.mrf.mxu0 }
  0xe0   : > { %v749_v32 = vpop.f32.mrf.mxu3  ;;  %v736_v33 = vadd.f32 %v735_v31, %v722_v29  ;;  %v710_v36 = vadd.f32 %v709_v34, %v374_v60  ;;  %v723_v37 = vpop.f32.mrf.mxu1 }
  0xe2   : > { %v724_v38 = vadd.f32 %v723_v37, %v710_v36  ;;  %v750_v39 = vadd.f32 %v749_v32, %v736_v33 }
  0xe4   : > { %v810_v44 = vmax.f32 %v750_v39, 0.0 }
  0xe7   : > { %v737_v41 = vpop.f32.mrf.mxu2 }
  0xe8   : > { %v738_v42 = vadd.f32 %v737_v41, %v724_v38  ;;  %v751_v43 = vpop.f32.mrf.mxu3 }
  0xea   : > { %v752_v45 = vadd.f32 %v751_v43, %v738_v42 }
  0xec   : > { %v812_v47 = vmax.f32 %v752_v45, 0.0 }
  0xee   : > { %v814_v48 = vpack.c.bf16 %v812_v47, %v810_v44 }
  0xf0   : > { %956 = vmatmul.bf16.vlgmr.msra.gmra.mxu0 %v814_v48 }
  0xf7   : > { %v763_v50 = vpop.f32.mrf.mxu0 }
  0xf8   : > { %v777_v51 = vpop.f32.mrf.mxu1  ;;  %v764_v52 = vadd.f32 %v763_v50, %v375_v49 }
  0xfa   : > { %v778_v54 = vadd.f32 %v777_v51, %v764_v52 }
  0xff   : > { %v791_v53 = vpop.f32.mrf.mxu2  ;;  %v765_v57 = vpop.f32.mrf.mxu0 }
 0x100   : > { %v805_v56 = vpop.f32.mrf.mxu3  ;;  %v766_v58 = vadd.f32 %v765_v57, %v375_v49  ;;  %v792_v61 = vadd.f32 %v791_v53, %v778_v54  ;;  %v779_v62 = vpop.f32.mrf.mxu1 }
 0x102   : > { %v780_v63 = vadd.f32 %v779_v62, %v766_v58  ;;  %v806_v2 = vadd.f32 %v805_v56, %v792_v61 }
 0x104   : > { %v811_v6 = vmax.f32 %v806_v2, 0.0 }
 0x107   : > { %v793_v1 = vpop.f32.mrf.mxu2 }
 0x108   : > { %v794_v3 = vadd.f32 %v793_v1, %v780_v63  ;;  %v807_v4 = vpop.f32.mrf.mxu3 }
 0x10a   : > { %v808_v5 = vadd.f32 %v807_v4, %v794_v3 }
 0x10c   : > { %v813_v7 = vmax.f32 %v808_v5, 0.0 }
 0x10e   : > { %v815_v8 = vpack.c.bf16 %v813_v7, %v811_v6 }
 0x110   : > { %970 = vmatmul.bf16.vlgmr.msra.gmra.mxu1 %v815_v8 }
 0x16d   : > { %v957_v10 = vpop.f32.mrf.mxu0 }
 0x16e   : > { %v958_v13 = vadd.f32 %v1661_v11, %v957_v10 }
 0x175   : > { %v959_v18 = vpop.f32.mrf.mxu0 }
 0x176   : > { %v960_v19 = vadd.f32 %v1661_v11, %v959_v18 }
 0x18d   : > { %v971_v14 = vpop.f32.mrf.mxu1 }
 0x18e   : > { %v972_v15 = vadd.f32 %v971_v14, %v958_v13 }
 0x190   : > { %v1028_v16 = vsel %vm1027_vm0, %v972_v15, 0.0  ;;  %v979_v17 = vsel %vm978_vm1, %v972_v15, -inf }
 0x191   : > { %981 = vmax.xlane.f32.xlu0 %v979_v17 }
 0x195   : > { %v973_v20 = vpop.f32.mrf.mxu1 }
 0x196   : > { %v974_v21 = vadd.f32 %v973_v20, %v960_v19 }
 0x198   : > { %v1029_v22 = vsel %vm1027_vm0, %v974_v21, 0.0  ;;  %v980_v23 = vsel %vm978_vm1, %v974_v21, -inf }
 0x199   : > { %983 = vmax.xlane.f32.xlu0 %v980_v23 }
 0x204   : > { %v982_v24 = vpop.xlane.xlu0 %981 }
 0x205   : > { %v985_v59 = vsub.f32 %v979_v17, %v982_v24 }
 0x207   : > { %v987_v0 = vmul.f32 1.442695, %v985_v59 }
 0x209   : > { %1662 = vpow2.f32 %v987_v0 }
 0x20c   : > { %v984_v55 = vpop.xlane.xlu0 %983 }
 0x20d   : > { %v986_v60 = vsub.f32 %v980_v23, %v984_v55 }
 0x20f   : > { %v1663_v25 = vpop.eup %1662  ;;  %v989_v26 = vmul.f32 1.442695, %v986_v60 }
 0x210   : > { %v991_v27 = vsel %vm978_vm1, %v1663_v25, 0.0 }
 0x211   : > { %1664 = vpow2.f32 %v989_v26  ;;  %993 = vadd.xlane.f32.xlu1 %v991_v27 }
 0x217   : > { %v1665_v28 = vpop.eup %1664 }
 0x218   : > { %v992_v29 = vsel %vm978_vm1, %v1665_v28, 0.0 }
 0x219   : > { %995 = vadd.xlane.f32.xlu1 %v992_v29 }
 0x284   : > { %v994_v30 = vpop.xlane.xlu1 %993 }
 0x285   : > { %1666 = vrcp.f32 %v994_v30  ;;  %v1008_v35 = vand.u32 2147483648, %v994_v30  ;;  %v1006_v37 = vand.u32 2147483647, %v994_v30  ;;  %vm1002_vm3 = vweird.f32 %v994_v30 }
 0x287   : > { %v1009_v40 = vor.u32 1.1754944e-38, %v1008_v35  ;;  %vm1007_vm5 = vcmp.eq.f32.partialorder %v1006_v37, 8.507059e+37 }
 0x28b   : > { %v1667_v31 = vpop.eup %1666 }
 0x28c   : > { %v998_v32 = vmul.f32 %v1667_v31, %v994_v30  ;;  %v996_v33 = vpop.xlane.xlu1 %995  ;;  %vm1003_vm2 = vweird.f32 %v1667_v31 }
 0x28d   : > { %1668 = vrcp.f32 %v996_v33  ;;  %vm1004_vm4 = vmor %vm1002_vm3, %vm1003_vm2  ;;  %v1023_v46 = vand.u32 2147483648, %v996_v33  ;;  %v1021_v49 = vand.u32 2147483647, %v996_v33  ;;  %vm1017_vm7 = vweird.f32 %v996_v33 }
 0x28e   : > { %v999_v34 = vsub.f32 1.0, %v998_v32 }
 0x28f   : > { %v1024_v51 = vor.u32 1.1754944e-38, %v1023_v46  ;;  %vm1022_vm9 = vcmp.eq.f32.partialorder %v1021_v49, 8.507059e+37 }
 0x290   : > { %v1000_v36 = vmul.f32 %v1667_v31, %v999_v34 }
 0x292   : > { %v1001_v38 = vadd.f32 %v1667_v31, %v1000_v36 }
 0x293   : > { %v1669_v39 = vpop.eup %1668 }
 0x294   : > { %v1005_v41 = vsel %vm1004_vm4, %v1667_v31, %v1001_v38  ;;  %v1013_v42 = vmul.f32 %v1669_v39, %v996_v33  ;;  %vm1018_vm6 = vweird.f32 %v1669_v39 }
 0x295   : > { %v1010_v43 = vsel %vm1007_vm5, %v1009_v40, %v1005_v41  ;;  %vm1019_vm8 = vmor %vm1017_vm7, %vm1018_vm6 }
 0x296   : > { %v1011_v44 = vmul.f32 %v1010_v43, %v991_v27  ;;  %v1014_v45 = vsub.f32 1.0, %v1013_v42 }
 0x298   : > { %v1030_v47 = vadd.f32 %v1028_v16, %v1011_v44  ;;  %v1015_v48 = vmul.f32 %v1669_v39, %v1014_v45 }
 0x29a   : > { %v1016_v50 = vadd.f32 %v1669_v39, %v1015_v48  ;;  %1032 = vst [vmem:[%s293_s12] sm:$0xff] %v1030_v47 }
 0x29c   : > { %v1020_v52 = vsel %vm1019_vm8, %v1669_v39, %v1016_v50 }
 0x29d   : > { %v1025_v53 = vsel %vm1022_vm9, %v1024_v51, %v1020_v52 }
 0x29e   : > { %v1026_v54 = vmul.f32 %v1025_v53, %v992_v29 }
 0x2a0   : > { %v1031_v56 = vadd.f32 %v1029_v22, %v1026_v54 }
 0x2a2   : > { %1033 = vst [vmem:[%s293_s12 + $0x8] sm:$0xff] %v1031_v56 }
 0x2a3   : > { %1817 = shalt.err (!%p1814_p10)
}
 0x2a4   : > { %s1875_s17 = smov 128   ;;  %s1876_s16 = smov 8  }
 0x2a5   : > { %1590 = dma.vmem_to_hbm [thread:$0]  (%p1990_p7), %s1048_s22, 256, %s1050_s13, %s1035_s14, %s1875_s17, %s1875_s17, %s1876_s16  }
 0x2a6 PF: > { %s1064_s23 = sand.u32 1, %s1852_s18   ;;  %p2113_p12 = scmp.ge.s32.totalorder %s1864_s21, 2 }
 0x2a7   : > { %s1065_s26 = scalar_lea.sflag [#allocation4], %s1064_s23 }
 0x2a8   : > { %p1607_p13 = pnand %p2113_p12, %p1942_p6 }
 0x2aa   : > { %p1608_p0 = pneg %p1607_p13 }
 0x2ac   : > { %1847 = dma.done.wait (%p1608_p0), %s1065_s26, 256  }
 0x2ad   : > { %1849 = vsyncadd (%p1608_p0), %s1065_s26, 4294967040  ;;  %p20_p3 = scmp.ge.s32.totalorder %s1976_s30, 4   ;;  %s2114_s18 = smov %s1856_s19 }
 0x2ae   : > { %s2115_s19 = smov %s1860_s20  ;;  %s2116_s20 = smov %s1986_s9 }
 0x2af   : > { %s2117_s21 = smov %s1976_s30  ;;  %22 = sbr.rel (!%p20_p3) target bundleno = 7 (0x7), region = 97 }
 0x2b4   :  { %1071 = vsyncpa [#allocation3], 1 }
 0x2b5   :  { %1073 = vsyncpa [#allocation3 + $0x1], 1 }
 0x2b6   :  { %1074 = vsyncpa [#allocation6], 1 }
 0x2b7   :  { %1075 = vsyncpa [#allocation9], 1 }
 0x2b8   :  { %1076 = vsyncpa [#allocation4], 1 }
 0x2b9   :  { %1078 = vsyncpa [#allocation4 + $0x1], 1 }

// kernel: tpu_custom_call.1
= control target key start
LH: loop header
LB: loop body
LE: loop exit
PB: predicated region body
PF: predicated region fallthrough
CT: control target
= control target key end

     0   :  { %10 = vsyncpa [#allocation3], 0  ;;  %s2101_s0 = inlined_call_operand.hbm [shape: f32[32,512], index: 0, kind: input, shape index: {}]   ;;  %s2102_s1 = inlined_call_operand.hbm [shape: bf16[512,256], index: 1, kind: input, shape index: {}]   ;;  %s2103_s2 = inlined_call_operand.hbm [shape: f32[1,256], index: 2, kind: input, shape index: {}]   ;;  %s2104_s3 = inlined_call_operand.hbm [shape: bf16[256,128], index: 3, kind: input, shape index: {}]   ;;  %s2105_s4 = inlined_call_operand.vmem [shape: f32[1,128], index: 4, kind: input, shape index: {}]   ;;  %s2106_s5 = inlined_call_operand.hbm [shape: f32[32,128], index: 5, kind: output, shape index: {}]  }
   0x1   :  { %12 = vsyncpa [#allocation3 + $0x1], 0 }
   0x2   :  { %13 = vsyncpa [#allocation6], 0 }
   0x3   :  { %14 = vsyncpa [#allocation9], 0 }
   0x4   :  { %15 = vsyncpa [#allocation4], 0 }
   0x5   :  { %17 = vsyncpa [#allocation4 + $0x1], 0  ;;  %s1907_s18 = smov 0   ;;  %s1909_s19 = smov 0  }
   0x6   :  { %s1911_s20 = smov 0   ;;  %s1913_s21 = smov 0  }
   0x7 LB: > { %s1928_s22 = sadd.s32 4294967295, %s1864_s21   ;;  %s1152_s23 = sadd.s32 4294967294, %s1864_s21   ;;  %s1864_s21 = sphi %s1913_s21, %s2117_s21   ;;  %s1860_s20 = sphi %s1911_s20, %s2116_s20   ;;  %s1856_s19 = sphi %s1909_s19, %s2115_s19   ;;  %s1852_s18 = sphi %s1907_s18, %s2114_s18  }
   0x8   : > { %p43_p0 = scmp.ne.s32.totalorder %s1856_s19, %s1852_s18  ;;  %p44_p1 = scmp.eq.s32.totalorder %s1928_s22, 0 }
   0x9   : > { %p151_p2 = scmp.eq.s32.totalorder %s1928_s22, 1  ;;  %p157_p3 = scmp.eq.s32.totalorder %s1152_s23, 1 }
   0xa   : > { %p1937_p4 = por %p44_p1, %p43_p0  ;;  %p1153_p5 = scmp.ge.s32.totalorder %s1864_s21, 1 }
   0xb   : > { %p1942_p6 = por %p157_p3, %p43_p0  ;;  %p164_p7 = scmp.lt.s32.totalorder %s1864_s21, 3 }
   0xc   : > { %s175_s28 = sshll.u32 %s2102_s1, 4  ;;  %s1866_s30 = smov [#allocation5]   ;;  %s176_s28 = int_to_ptr.hbm [resolvable:$true] %s175_s28 }
   0xd   : > { %p1950_p8 = pnand %p1153_p5, %p164_p7  ;;  %s177_s6 = sshll.u32 %s1866_s30, 4  ;;  %s178_s6 = int_to_ptr.vmem [resolvable:$true] %s177_s6 }
   0xe   : > { %s190_s10 = sshll.u32 %s2103_s2, 4  ;;  %s1867_s11 = smov 128   ;;  %s191_s10 = int_to_ptr.hbm [resolvable:$true] %s190_s10 }
   0xf   : > { %p1592_p9 = pneg %p1950_p8  ;;  %s1868_s12 = smov 8  }
  0x10   : > { %s1869_s13 = smov [#allocation7]   ;;  %s201_s17 = sshll.u32 %s2104_s3, 4  ;;  %s202_s17 = int_to_ptr.hbm [resolvable:$true] %s201_s17 }
  0x11   : > { %p1958_p10 = pnand %p1592_p9, %p44_p1  ;;  %s192_s14 = sshll.u32 %s1869_s13, 4  ;;  %s193_s14 = int_to_ptr.vmem [resolvable:$true] %s192_s14 }
  0x12   : > { %s1870_s23 = smov [#allocation8]   ;;  %s1871_s27 = smov 64  }
  0x13   : > { %1595 = dma.hbm_to_vmem [thread:$0]  (!%p1958_p10), %s176_s28, 8192, %s178_s6, [#allocation6], %s1867_s11, %s1867_s11, %s1868_s12  }
  0x14   : > { %1598 = dma.hbm_to_vmem [thread:$0]  (!%p1958_p10), %s191_s10, 32, %s193_s14, [#allocation6]  }
  0x15   : > { %s203_s26 = sshll.u32 %s1870_s23, 4  ;;  %s1872_s28 = smov 4   ;;  %s204_s26 = int_to_ptr.vmem [resolvable:$true] %s203_s26 }
  0x16   : > { %1601 = dma.hbm_to_vmem [thread:$0]  (!%p1958_p10), %s202_s17, 2048, %s204_s26, [#allocation9], %s1871_s27, %s1871_s27, %s1872_s28  }
  0x17   : > { %s1976_s30 = sadd.s32 1, %s1864_s21   ;;  %s30_s8 = sadd.s32 1, %s1860_s20 }
  0x18   : > { %s27_s6 = ssub.s32 %s1864_s21, %s1976_s30  ;;  %p37_p13 = scmp.ne.s32.totalorder %s1860_s20, %s1856_s19 }
  0x19   : > { %p28_p12 = scmp.eq.s32.totalorder %s27_s6, 0  ;;  %p38_p0 = scmp.eq.s32.totalorder %s1864_s21, 0 }
  0x1a   : > { %p1613_p3 = scmp.lt.s32.totalorder %s1864_s21, 2  ;;  %p1990_p7 = por %p151_p2, %p37_p13 }
  0x1b   : > { %s1986_s9 = scalar_select %p28_p12, %s1860_s20, %s30_s8  }
  0x1c   : > { %p39_p5 = por %p38_p0, %p37_p13  ;;  %s220_s7 = sand.u32 1, %s1860_s20  }
  0x1d   : > { %s1494_s11 = sshll.u32 %s1864_s21, 6  ;;  %s1158_s12 = sshll.u32 %s220_s7, 6 }
  0x1e   : > { %s230_s15 = scalar_lea.hbm %s2101_s0, %s1494_s11  ;;  %s224_s17 = scalar_lea.vmem [#allocation2], %s1158_s12 }
  0x1f   : > { %s231_s16 = sshll.u32 %s230_s15, 4  ;;  %s233_s23 = sshll.u32 %s224_s17, 4  ;;  %s232_s16 = int_to_ptr.hbm [resolvable:$true] %s231_s16  ;;  %s234_s23 = int_to_ptr.vmem [resolvable:$true] %s233_s23 }
  0x20   : > { %p2001_p9 = pnand %p1613_p3, %p39_p5  ;;  %s221_s27 = scalar_lea.sflag [#allocation3], %s220_s7 }
  0x21   : > { %s1760_s28 = sshra.s32 %s232_s16, 4  ;;  %s1767_s12 = scalar_lea.hbm %s2101_s0, 128  ;;  %s1761_s28 = int_to_ptr.hbm [resolvable:$true] %s1760_s28 }
  0x22   : > { %s1762_s6 = scalar_lea.hbm %s1761_s28, 64  ;;  %p1764_p10 = pneg %p2001_p9 }
  0x23   : > { %p1763_p2 = scmp.ne.s32.totalorder %s1761_s28, %s1762_s6  ;;  %p1768_p0 = scmp.lt.s32.totalorder %s1761_s28, %s2101_s0 }
  0x24   : > { %p1769_p3 = scmp.lt.s32.totalorder %s1767_s12, %s1762_s6 }
  0x25   : > { %p1765_p12 = pnand %p1764_p10, %p1763_p2 }
  0x26   : > { %p1770_p5 = por %p1769_p3, %p1768_p0 }
  0x27   : > { %p1766_p13 = pneg %p1765_p12 }
  0x29   : > { %p1771_p11 = pnand %p1770_p5, %p1766_p13 }
  0x2b   : > { %1774 = shalt.err (!%p1771_p11)
}
  0x2c   : > { %s1873_s7 = smov 512   ;;  %s1874_s15 = smov 32  }
  0x2d   : > { %1605 = dma.hbm_to_vmem [thread:$0]  (!%p2001_p9), %s232_s16, 1024, %s234_s23, %s221_s27, %s1873_s7, %s1873_s7, %s1874_s15  }
  0x2e   : > { %245 = sbr.rel (%p1950_p8) target bundleno = 678 (0x2a6), region = 40  ;;  %s2018_s17 = sand.u32 (!%p1950_p8), 1, %s1856_s19  }
  0x2f   : > { %s1163_s8 = sshll.u32 (!%p1950_p8), %s2018_s17, 6  ;;  %s248_s28 = scalar_lea.sflag (!%p1950_p8), [#allocation3], %s2018_s17 }
  0x30   : > { %s2022_s6 = scalar_lea.vmem (!%p1950_p8), [#allocation2], %s1163_s8 }
  0x33   : > { %1835 = dma.done.wait (%p1937_p4), %s248_s28, 1024  }
  0x34   : > { %1837 = vsyncadd (%p1937_p4), %s248_s28, 4294966272 }
  0x35   : > { %1839 = dma.done.wait (%p44_p1), [#allocation6], 8224  }
  0x36   : > { %1841 = vsyncadd (%p44_p1), [#allocation6], 4294959072 }
  0x37   : > { %1843 = dma.done.wait (%p44_p1), [#allocation9], 2048  }
  0x38   : > { %1845 = vsyncadd (%p44_p1), [#allocation9], 4294965248  ;;  %v1226_v0 = vld [vmem:[#allocation5 + $0x70] sm:$0xf]  ;;  %v1510_v1 = vld [vmem:[#allocation5 + $0x74] sm:$0xf0] }
  0x39   : > { %v1290_v2 = vld [vmem:[#allocation5 + $0xf0] sm:$0xf]  ;;  %v1227_v3 = vor.u32 %v1510_v1, %v1226_v0  ;;  %v1526_v4 = vld [vmem:[#allocation5 + $0xf4] sm:$0xf0]  ;;  %v1218_v11 = vld [vmem:[#allocation5 + $0x60] sm:$0xf] }
  0x3a   : > { %v1354_v5 = vld [vmem:[#allocation5 + $0x170] sm:$0xf]  ;;  %v1542_v6 = vld [vmem:[#allocation5 + $0x174] sm:$0xf0]  ;;  %v1291_v7 = vor.u32 %v1526_v4, %v1290_v2  ;;  %v1508_v13 = vld [vmem:[#allocation5 + $0x64] sm:$0xf0] }
  0x3b   : > { %v1355_v8 = vor.u32 %v1542_v6, %v1354_v5  ;;  %v1418_v9 = vld [vmem:[#allocation5 + $0x1f0] sm:$0xf]  ;;  %v1558_v10 = vld [vmem:[#allocation5 + $0x1f4] sm:$0xf0]  ;;  %698 = vmatpush.bf16.msra.mxu0 %v1227_v3  ;;  %v1282_v14 = vld [vmem:[#allocation5 + $0xe0] sm:$0xf]  ;;  %v1219_v16 = vor.u32 %v1508_v13, %v1218_v11 }
  0x3c   : > { %v1419_v12 = vor.u32 %v1558_v10, %v1418_v9  ;;  %v1524_v15 = vld [vmem:[#allocation5 + $0xe4] sm:$0xf0]  ;;  %712 = vmatpush.bf16.msra.mxu1 %v1291_v7  ;;  %v1346_v18 = vld [vmem:[#allocation5 + $0x160] sm:$0xf]  ;;  %v1210_v23 = vld [vmem:[#allocation5 + $0x50] sm:$0xf] }
  0x3d   : > { %726 = vmatpush.bf16.msra.mxu2 %v1355_v8  ;;  %v1283_v17 = vor.u32 %v1524_v15, %v1282_v14  ;;  %v1540_v19 = vld [vmem:[#allocation5 + $0x164] sm:$0xf0]  ;;  %v1410_v20 = vld [vmem:[#allocation5 + $0x1e0] sm:$0xf]  ;;  %v1506_v24 = vld [vmem:[#allocation5 + $0x54] sm:$0xf0] }
  0x3e   : > { %740 = vmatpush.bf16.msra.mxu3 %v1419_v12  ;;  %v1347_v21 = vor.u32 %v1540_v19, %v1346_v18  ;;  %v1556_v22 = vld [vmem:[#allocation5 + $0x1e4] sm:$0xf0]  ;;  %v1274_v26 = vld [vmem:[#allocation5 + $0xd0] sm:$0xf]  ;;  %v1522_v27 = vld [vmem:[#allocation5 + $0xd4] sm:$0xf0]  ;;  %v1211_v29 = vor.u32 %v1506_v24, %v1210_v23 }
  0x3f   : > { %v1411_v25 = vor.u32 %v1556_v22, %v1410_v20  ;;  %v1338_v28 = vld [vmem:[#allocation5 + $0x150] sm:$0xf]  ;;  %699 = vmatpush.bf16.msra.mxu0 %v1219_v16  ;;  %v1538_v30 = vld [vmem:[#allocation5 + $0x154] sm:$0xf0]  ;;  %v1275_v33 = vor.u32 %v1522_v27, %v1274_v26  ;;  %v1202_v35 = vld [vmem:[#allocation5 + $0x40] sm:$0xf] }
  0x40   : > { %v1402_v31 = vld [vmem:[#allocation5 + $0x1d0] sm:$0xf]  ;;  %v1554_v32 = vld [vmem:[#allocation5 + $0x1d4] sm:$0xf0]  ;;  %713 = vmatpush.bf16.msra.mxu1 %v1283_v17  ;;  %v1339_v34 = vor.u32 %v1538_v30, %v1338_v28  ;;  %v1504_v36 = vld [vmem:[#allocation5 + $0x44] sm:$0xf0] }
  0x41   : > { %727 = vmatpush.bf16.msra.mxu2 %v1347_v21  ;;  %v1266_v37 = vld [vmem:[#allocation5 + $0xc0] sm:$0xf]  ;;  %v1403_v38 = vor.u32 %v1554_v32, %v1402_v31  ;;  %v1520_v39 = vld [vmem:[#allocation5 + $0xc4] sm:$0xf0]  ;;  %v1203_v44 = vor.u32 %v1504_v36, %v1202_v35  ;;  %v1194_v47 = vld [vmem:[#allocation5 + $0x30] sm:$0xf] }
  0x42   : > { %741 = vmatpush.bf16.msra.mxu3 %v1411_v25  ;;  %v1330_v40 = vld [vmem:[#allocation5 + $0x140] sm:$0xf]  ;;  %v1536_v41 = vld [vmem:[#allocation5 + $0x144] sm:$0xf0]  ;;  %v1267_v45 = vor.u32 %v1520_v39, %v1266_v37  ;;  %v1502_v48 = vld [vmem:[#allocation5 + $0x34] sm:$0xf0] }
  0x43   : > { %v1394_v42 = vld [vmem:[#allocation5 + $0x1c0] sm:$0xf]  ;;  %v1552_v43 = vld [vmem:[#allocation5 + $0x1c4] sm:$0xf0]  ;;  %700 = vmatpush.bf16.msra.mxu0 %v1211_v29  ;;  %v1331_v46 = vor.u32 %v1536_v41, %v1330_v40  ;;  %v1258_v49 = vld [vmem:[#allocation5 + $0xb0] sm:$0xf]  ;;  %v1195_v56 = vor.u32 %v1502_v48, %v1194_v47 }
  0x44   : > { %714 = vmatpush.bf16.msra.mxu1 %v1275_v33  ;;  %v1395_v50 = vor.u32 %v1552_v43, %v1394_v42  ;;  %v1518_v51 = vld [vmem:[#allocation5 + $0xb4] sm:$0xf0]  ;;  %v1322_v52 = vld [vmem:[#allocation5 + $0x130] sm:$0xf]  ;;  %v1186_v59 = vld [vmem:[#allocation5 + $0x20] sm:$0xf] }
  0x45   : > { %728 = vmatpush.bf16.msra.mxu2 %v1339_v34  ;;  %v1534_v53 = vld [vmem:[#allocation5 + $0x134] sm:$0xf0]  ;;  %v1386_v54 = vld [vmem:[#allocation5 + $0x1b0] sm:$0xf]  ;;  %v1259_v57 = vor.u32 %v1518_v51, %v1258_v49  ;;  %v1500_v60 = vld [vmem:[#allocation5 + $0x24] sm:$0xf0] }
  0x46   : > { %742 = vmatpush.bf16.msra.mxu3 %v1403_v38  ;;  %v1550_v55 = vld [vmem:[#allocation5 + $0x1b4] sm:$0xf0]  ;;  %v1323_v58 = vor.u32 %v1534_v53, %v1322_v52  ;;  %v1250_v61 = vld [vmem:[#allocation5 + $0xa0] sm:$0xf]  ;;  %v1516_v63 = vld [vmem:[#allocation5 + $0xa4] sm:$0xf0]  ;;  %v1187_v4 = vor.u32 %v1500_v60, %v1186_v59 }
  0x47   : > { %701 = vmatpush.bf16.msra.mxu0 %v1203_v44  ;;  %v1387_v62 = vor.u32 %v1550_v55, %v1386_v54  ;;  %v1314_v0 = vld [vmem:[#allocation5 + $0x120] sm:$0xf]  ;;  %v1532_v1 = vld [vmem:[#allocation5 + $0x124] sm:$0xf0]  ;;  %v1178_v5 = vld [vmem:[#allocation5 + $0x10] sm:$0xf]  ;;  %v1251_v6 = vor.u32 %v1516_v63, %v1250_v61 }
  0x48   : > { %715 = vmatpush.bf16.msra.mxu1 %v1267_v45  ;;  %v1378_v2 = vld [vmem:[#allocation5 + $0x1a0] sm:$0xf]  ;;  %v1548_v3 = vld [vmem:[#allocation5 + $0x1a4] sm:$0xf0]  ;;  %v1315_v7 = vor.u32 %v1532_v1, %v1314_v0  ;;  %v1498_v8 = vld [vmem:[#allocation5 + $0x14] sm:$0xf0] }
  0x49   : > { %729 = vmatpush.bf16.msra.mxu2 %v1331_v46  ;;  %v1242_v9 = vld [vmem:[#allocation5 + $0x90] sm:$0xf]  ;;  %v1514_v10 = vld [vmem:[#allocation5 + $0x94] sm:$0xf0]  ;;  %v1379_v11 = vor.u32 %v1548_v3, %v1378_v2  ;;  %v1170_v16 = vld [vmem:[#allocation5] sm:$0xf]  ;;  %v1179_v18 = vor.u32 %v1498_v8, %v1178_v5 }
  0x4a   : > { %743 = vmatpush.bf16.msra.mxu3 %v1395_v50  ;;  %v1306_v12 = vld [vmem:[#allocation5 + $0x110] sm:$0xf]  ;;  %v1530_v13 = vld [vmem:[#allocation5 + $0x114] sm:$0xf0]  ;;  %v1496_v17 = vld [vmem:[#allocation5 + $0x4] sm:$0xf0]  ;;  %v1243_v23 = vor.u32 %v1514_v10, %v1242_v9 }
  0x4b   : > { %702 = vmatpush.bf16.msra.mxu0 %v1195_v56  ;;  %v1370_v14 = vld [vmem:[#allocation5 + $0x190] sm:$0xf]  ;;  %v1546_v15 = vld [vmem:[#allocation5 + $0x194] sm:$0xf0]  ;;  %v1234_v19 = vld [vmem:[#allocation5 + $0x80] sm:$0xf]  ;;  %v1307_v24 = vor.u32 %v1530_v13, %v1306_v12  ;;  %v1171_v35 = vor.u32 %v1496_v17, %v1170_v16 }
  0x4c   : > { %716 = vmatpush.bf16.msra.mxu1 %v1259_v57  ;;  %v1512_v20 = vld [vmem:[#allocation5 + $0x84] sm:$0xf0]  ;;  %v1298_v21 = vld [vmem:[#allocation5 + $0x100] sm:$0xf]  ;;  %v1509_v27 = vld [vmem:[#allocation5 + $0x74] sm:$0xf]  ;;  %v1371_v28 = vor.u32 %v1546_v15, %v1370_v14 }
  0x4d   : > { %730 = vmatpush.bf16.msra.mxu2 %v1323_v58  ;;  %v1528_v22 = vld [vmem:[#allocation5 + $0x104] sm:$0xf0]  ;;  %v1362_v25 = vld [vmem:[#allocation5 + $0x180] sm:$0xf]  ;;  %v1228_v29 = vld [vmem:[#allocation5 + $0x78] sm:$0xf0]  ;;  %v1235_v39 = vor.u32 %v1512_v20, %v1234_v19 }
  0x4e   : > { %744 = vmatpush.bf16.msra.mxu3 %v1387_v62  ;;  %v1544_v26 = vld [vmem:[#allocation5 + $0x184] sm:$0xf0]  ;;  %v1525_v30 = vld [vmem:[#allocation5 + $0xf4] sm:$0xf]  ;;  %v1292_v31 = vld [vmem:[#allocation5 + $0xf8] sm:$0xf0]  ;;  %v1299_v40 = vor.u32 %v1528_v22, %v1298_v21  ;;  %v1231_v45 = vor.u32 %v1509_v27, %v1228_v29 }
  0x4f   : > { %703 = vmatpush.bf16.msra.mxu0 %v1187_v4  ;;  %v1541_v32 = vld [vmem:[#allocation5 + $0x174] sm:$0xf]  ;;  %v1356_v33 = vld [vmem:[#allocation5 + $0x178] sm:$0xf0]  ;;  %v296_v41 = vld [vmem:[%s2022_s6] sm:$0xff]  ;;  %v1363_v44 = vor.u32 %v1544_v26, %v1362_v25  ;;  %v1295_v49 = vor.u32 %v1525_v30, %v1292_v31  ;;  %s1167_s16 = sshll.u32 %s2018_s17, 4 }
  0x50   : > { %717 = vmatpush.bf16.msra.mxu1 %v1251_v6  ;;  %v1557_v34 = vld [vmem:[#allocation5 + $0x1f4] sm:$0xf]  ;;  %v1420_v36 = vld [vmem:[#allocation5 + $0x1f8] sm:$0xf0]  ;;  %v300_v42 = vld [vmem:[%s2022_s6 + $0x20] sm:$0xff]  ;;  %v1359_v50 = vor.u32 %v1541_v32, %v1356_v33  ;;  %s1575_s23 = sshll.u32 %s1928_s22, 4 }
  0x51   : > { %731 = vmatpush.bf16.msra.mxu2 %v1315_v7  ;;  %v298_v37 = vld [vmem:[%s2022_s6 + $0x10] sm:$0xff]  ;;  %v299_v43 = vld [vmem:[%s2022_s6 + $0x18] sm:$0xff]  ;;  %v1507_v47 = vld [vmem:[#allocation5 + $0x64] sm:$0xf]  ;;  %v1423_v54 = vor.u32 %v1557_v34, %v1420_v36  ;;  %v2046_v59 = vpack.c.bf16 %v300_v42, %v296_v41  ;;  %s1046_s11 = scalar_lea.hbm %s2106_s5, %s1575_s23  ;;  %s293_s12 = scalar_lea.vmem [#allocation10], %s1167_s16 }
  0x52   : > { %745 = vmatpush.bf16.msra.mxu3 %v1379_v11  ;;  %v302_v38 = vld [vmem:[%s2022_s6 + $0x30] sm:$0xff]  ;;  %v303_v46 = vld [vmem:[%s2022_s6 + $0x38] sm:$0xff]  ;;  %v1220_v48 = vld [vmem:[#allocation5 + $0x68] sm:$0xf0]  ;;  %s1047_s22 = sshll.u32 %s293_s12, 4  ;;  %s1049_s13 = sshll.u32 %s1046_s11, 4  ;;  %s1048_s22 = int_to_ptr.vmem [resolvable:$true] %s1047_s22  ;;  %s1050_s13 = int_to_ptr.hbm [resolvable:$true] %s1049_s13 }
  0x53   : > { %704 = vmatpush.bf16.msra.mxu0 %v1179_v18  ;;  %v1523_v51 = vld [vmem:[#allocation5 + $0xe4] sm:$0xf]  ;;  %v297_v52 = vld [vmem:[%s2022_s6 + $0x8] sm:$0xff]  ;;  %v2044_v55 = vpack.c.bf16 %v302_v38, %v298_v37  ;;  %v2048_v60 = vpack.c.bf16 %v303_v46, %v299_v43  ;;  %v1223_v63 = vor.u32 %v1507_v47, %v1220_v48  ;;  %v1505_v3 = vld [vmem:[#allocation5 + $0x54] sm:$0xf]  ;;  %s1035_s14 = scalar_lea.sflag [#allocation4], %s2018_s17 }
  0x54   : > { %718 = vmatpush.bf16.msra.mxu1 %v1243_v23  ;;  %v301_v53 = vld [vmem:[%s2022_s6 + $0x28] sm:$0xff]  ;;  %v1539_v57 = vld [vmem:[#allocation5 + $0x164] sm:$0xf]  ;;  %v1212_v4 = vld [vmem:[#allocation5 + $0x58] sm:$0xf0]  ;;  %s1804_s7 = sshra.s32 %s1050_s13, 4  ;;  %s1805_s7 = int_to_ptr.hbm [resolvable:$true] %s1804_s7 }
  0x55   : > { %732 = vmatpush.bf16.msra.mxu2 %v1307_v24  ;;  %v1284_v56 = vld [vmem:[#allocation5 + $0xe8] sm:$0xf0]  ;;  %v1555_v61 = vld [vmem:[#allocation5 + $0x1e4] sm:$0xf]  ;;  %v2050_v0 = vpack.c.bf16 %v301_v53, %v297_v52  ;;  %v1521_v5 = vld [vmem:[#allocation5 + $0xd4] sm:$0xf]  ;;  %v1215_v12 = vor.u32 %v1505_v3, %v1212_v4  ;;  %p1811_p11 = scmp.lt.s32.totalorder %s1805_s7, %s2106_s5 }
  0x56   : > { %746 = vmatpush.bf16.msra.mxu3 %v1371_v28  ;;  %v1348_v58 = vld [vmem:[#allocation5 + $0x168] sm:$0xf0]  ;;  %v1287_v1 = vor.u32 %v1523_v51, %v1284_v56  ;;  %v1276_v7 = vld [vmem:[#allocation5 + $0xd8] sm:$0xf0]  ;;  %v1537_v8 = vld [vmem:[#allocation5 + $0x154] sm:$0xf] }
  0x57   : > { %705 = vmatpush.bf16.msra.mxu0 %v1171_v35  ;;  %v1412_v62 = vld [vmem:[#allocation5 + $0x1e8] sm:$0xf0]  ;;  %v1351_v2 = vor.u32 %v1539_v57, %v1348_v58  ;;  %v1340_v9 = vld [vmem:[#allocation5 + $0x158] sm:$0xf0]  ;;  %v1553_v10 = vld [vmem:[#allocation5 + $0x1d4] sm:$0xf]  ;;  %v1279_v13 = vor.u32 %v1521_v5, %v1276_v7 }
  0x58   : > { %719 = vmatpush.bf16.msra.mxu1 %v1235_v39  ;;  %v1415_v6 = vor.u32 %v1555_v61, %v1412_v62  ;;  %v1404_v11 = vld [vmem:[#allocation5 + $0x1d8] sm:$0xf0]  ;;  %v1343_v14 = vor.u32 %v1537_v8, %v1340_v9  ;;  %v1503_v15 = vld [vmem:[#allocation5 + $0x44] sm:$0xf]  ;;  %v1204_v16 = vld [vmem:[#allocation5 + $0x48] sm:$0xf0] }
  0x59   : > { %733 = vmatpush.bf16.msra.mxu2 %v1299_v40  ;;  %v1519_v17 = vld [vmem:[#allocation5 + $0xc4] sm:$0xf]  ;;  %v1407_v18 = vor.u32 %v1553_v10, %v1404_v11  ;;  %v1268_v19 = vld [vmem:[#allocation5 + $0xc8] sm:$0xf0]  ;;  %v1207_v24 = vor.u32 %v1503_v15, %v1204_v16  ;;  %v1501_v27 = vld [vmem:[#allocation5 + $0x34] sm:$0xf] }
  0x5a   : > { %747 = vmatpush.bf16.msra.mxu3 %v1363_v44  ;;  %706 = vmatmul.bf16.vlgmr.msra.gmra.mxu0 %v2046_v59  ;;  %v1535_v20 = vld [vmem:[#allocation5 + $0x144] sm:$0xf]  ;;  %v1332_v21 = vld [vmem:[#allocation5 + $0x148] sm:$0xf0]  ;;  %v1271_v25 = vor.u32 %v1519_v17, %v1268_v19  ;;  %v1196_v28 = vld [vmem:[#allocation5 + $0x38] sm:$0xf0] }
  0x5b   : > { %754 = vmatpush.bf16.msrb.mxu0 %v1231_v45  ;;  %720 = vmatmul.bf16.vlgmr.msra.gmra.mxu1 %v2050_v0  ;;  %v1551_v22 = vld [vmem:[#allocation5 + $0x1c4] sm:$0xf]  ;;  %v1396_v23 = vld [vmem:[#allocation5 + $0x1c8] sm:$0xf0]  ;;  %v1335_v26 = vor.u32 %v1535_v20, %v1332_v21  ;;  %v1517_v29 = vld [vmem:[#allocation5 + $0xb4] sm:$0xf]  ;;  %v1199_v36 = vor.u32 %v1501_v27, %v1196_v28 }
  0x5c   : > { %768 = vmatpush.bf16.msrb.mxu1 %v1295_v49  ;;  %734 = vmatmul.bf16.vlgmr.msra.gmra.mxu2 %v2044_v55  ;;  %v1399_v30 = vor.u32 %v1551_v22, %v1396_v23  ;;  %v1260_v31 = vld [vmem:[#allocation5 + $0xb8] sm:$0xf0]  ;;  %v1533_v32 = vld [vmem:[#allocation5 + $0x134] sm:$0xf]  ;;  %v1499_v37 = vld [vmem:[#allocation5 + $0x24] sm:$0xf] }
  0x5d   : > { %782 = vmatpush.bf16.msrb.mxu2 %v1359_v50  ;;  %748 = vmatmul.bf16.vlgmr.msra.gmra.mxu3 %v2048_v60  ;;  %v1324_v33 = vld [vmem:[#allocation5 + $0x138] sm:$0xf0]  ;;  %v1549_v34 = vld [vmem:[#allocation5 + $0x1b4] sm:$0xf]  ;;  %v1263_v38 = vor.u32 %v1517_v29, %v1260_v31  ;;  %v1188_v40 = vld [vmem:[#allocation5 + $0x28] sm:$0xf0] }
  0x5e   : > { %796 = vmatpush.bf16.msrb.mxu3 %v1423_v54  ;;  %v1388_v35 = vld [vmem:[#allocation5 + $0x1b8] sm:$0xf0]  ;;  %v1327_v39 = vor.u32 %v1533_v32, %v1324_v33  ;;  %v1515_v41 = vld [vmem:[#allocation5 + $0xa4] sm:$0xf]  ;;  %v1252_v43 = vld [vmem:[#allocation5 + $0xa8] sm:$0xf0]  ;;  %v1191_v48 = vor.u32 %v1499_v37, %v1188_v40 }
  0x5f   : > { %755 = vmatpush.bf16.msrb.mxu0 %v1223_v63  ;;  %v1391_v42 = vor.u32 %v1549_v34, %v1388_v35  ;;  %v1531_v44 = vld [vmem:[#allocation5 + $0x124] sm:$0xf]  ;;  %v1316_v45 = vld [vmem:[#allocation5 + $0x128] sm:$0xf0]  ;;  %v1255_v49 = vor.u32 %v1515_v41, %v1252_v43  ;;  %v1497_v51 = vld [vmem:[#allocation5 + $0x14] sm:$0xf] }
  0x60   : > { %769 = vmatpush.bf16.msrb.mxu1 %v1287_v1  ;;  %v1547_v46 = vld [vmem:[#allocation5 + $0x1a4] sm:$0xf]  ;;  %v1380_v47 = vld [vmem:[#allocation5 + $0x1a8] sm:$0xf0]  ;;  %v1319_v50 = vor.u32 %v1531_v44, %v1316_v45  ;;  %v1180_v52 = vld [vmem:[#allocation5 + $0x18] sm:$0xf0] }
  0x61   : > { %783 = vmatpush.bf16.msrb.mxu2 %v1351_v2  ;;  %v1513_v53 = vld [vmem:[#allocation5 + $0x94] sm:$0xf]  ;;  %v1383_v54 = vor.u32 %v1547_v46, %v1380_v47  ;;  %v1244_v56 = vld [vmem:[#allocation5 + $0x98] sm:$0xf0]  ;;  %v1183_v63 = vor.u32 %v1497_v51, %v1180_v52  ;;  %v1495_v3 = vld [vmem:[#allocation5 + $0x4] sm:$0xf] }
  0x62   : > { %797 = vmatpush.bf16.msrb.mxu3 %v1415_v6  ;;  %v1529_v57 = vld [vmem:[#allocation5 + $0x114] sm:$0xf]  ;;  %v1308_v58 = vld [vmem:[#allocation5 + $0x118] sm:$0xf0]  ;;  %v1247_v1 = vor.u32 %v1513_v53, %v1244_v56  ;;  %v1172_v4 = vld [vmem:[#allocation5 + $0x8] sm:$0xf0] }
  0x63   : > { %756 = vmatpush.bf16.msrb.mxu0 %v1215_v12  ;;  %v1545_v61 = vld [vmem:[#allocation5 + $0x194] sm:$0xf]  ;;  %v1372_v62 = vld [vmem:[#allocation5 + $0x198] sm:$0xf0]  ;;  %v1311_v2 = vor.u32 %v1529_v57, %v1308_v58  ;;  %v1511_v5 = vld [vmem:[#allocation5 + $0x84] sm:$0xf]  ;;  %v1175_v12 = vor.u32 %v1495_v3, %v1172_v4 }
  0x64   : > { %770 = vmatpush.bf16.msrb.mxu1 %v1279_v13  ;;  %v1375_v6 = vor.u32 %v1545_v61, %v1372_v62  ;;  %v1236_v7 = vld [vmem:[#allocation5 + $0x88] sm:$0xf0]  ;;  %v1527_v8 = vld [vmem:[#allocation5 + $0x104] sm:$0xf]  ;;  %v1566_v16 = vld [vmem:[#allocation8 + $0x38] sm:$0xff]  ;;  %s1806_s15 = scalar_lea.hbm %s1805_s7, 16 }
  0x65   : > { %784 = vmatpush.bf16.msrb.mxu2 %v1343_v14  ;;  %v1300_v9 = vld [vmem:[#allocation5 + $0x108] sm:$0xf0]  ;;  %v1543_v10 = vld [vmem:[#allocation5 + $0x184] sm:$0xf]  ;;  %v1239_v13 = vor.u32 %v1511_v5, %v1236_v7  ;;  %v1565_v17 = vld [vmem:[#allocation8 + $0x30] sm:$0xff]  ;;  %p1807_p1 = scmp.ne.s32.totalorder %s1805_s7, %s1806_s15  ;;  %s1810_s6 = scalar_lea.hbm %s2106_s5, 32 }
  0x66   : > { %798 = vmatpush.bf16.msrb.mxu3 %v1407_v18  ;;  %v1364_v11 = vld [vmem:[#allocation5 + $0x188] sm:$0xf0]  ;;  %v1303_v14 = vor.u32 %v1527_v8, %v1300_v9  ;;  %v1563_v19 = vld [vmem:[#allocation8 + $0x20] sm:$0xff]  ;;  %v1562_v20 = vld [vmem:[#allocation8 + $0x18] sm:$0xff]  ;;  %v976_v9 = vlaneseq  ;;  %p1812_p9 = scmp.lt.s32.totalorder %s1810_s6, %s1806_s15 }
  0x67   : > { %757 = vmatpush.bf16.msrb.mxu0 %v1207_v24  ;;  %v1367_v15 = vor.u32 %v1543_v10, %v1364_v11  ;;  %v1564_v18 = vld [vmem:[#allocation8 + $0x28] sm:$0xff]  ;;  %v1561_v21 = vld [vmem:[#allocation8 + $0x10] sm:$0xff]  ;;  %v1559_v23 = vld [vmem:[#allocation8] sm:$0xff]  ;;  %p1808_p4 = pnand %p1807_p1, %p1990_p7 }
  0x68   : > { %771 = vmatpush.bf16.msrb.mxu1 %v1271_v25  ;;  %v1560_v22 = vld [vmem:[#allocation8 + $0x8] sm:$0xff]  ;;  %v1574_v24 = vld [vmem:[#allocation8 + $0x78] sm:$0xff]  ;;  %v1571_v25 = vld [vmem:[#allocation8 + $0x60] sm:$0xff]  ;;  %p1813_p2 = por %p1812_p9, %p1811_p11 }
  0x69   : > { %785 = vmatpush.bf16.msrb.mxu2 %v1335_v26  ;;  %v1569_v35 = vld [vmem:[#allocation8 + $0x50] sm:$0xff]  ;;  %v1568_v40 = vld [vmem:[#allocation8 + $0x48] sm:$0xff]  ;;  %v1567_v46 = vld [vmem:[#allocation8 + $0x40] sm:$0xff]  ;;  %p1809_p8 = pneg %p1808_p4 }
  0x6a   : > { %799 = vmatpush.bf16.msrb.mxu3 %v1399_v30  ;;  %v1570_v30 = vld [vmem:[#allocation8 + $0x58] sm:$0xff] }
  0x6b   : > { %758 = vmatpush.bf16.msrb.mxu0 %v1199_v36  ;;  %v1661_v11 = vld [vmem:[%s2105_s4] ss:$0 sm:$0xff]  ;;  %p1814_p10 = pnand %p1813_p2, %p1809_p8 }
  0x6c   : > { %772 = vmatpush.bf16.msrb.mxu1 %v1263_v38 }
  0x6d   : > { %786 = vmatpush.bf16.msrb.mxu2 %v1327_v39 }
  0x6e   : > { %800 = vmatpush.bf16.msrb.mxu3 %v1391_v42 }
  0x6f   : > { %759 = vmatpush.bf16.msrb.mxu0 %v1191_v48 }
  0x70   : > { %773 = vmatpush.bf16.msrb.mxu1 %v1255_v49 }
  0x71   : > { %787 = vmatpush.bf16.msrb.mxu2 %v1319_v50 }
  0x72   : > { %801 = vmatpush.bf16.msrb.mxu3 %v1383_v54 }
  0x73   : > { %760 = vmatpush.bf16.msrb.mxu0 %v1183_v63 }
  0x74   : > { %774 = vmatpush.bf16.msrb.mxu1 %v1247_v1 }
  0x75   : > { %788 = vmatpush.bf16.msrb.mxu2 %v1311_v2 }
  0x76   : > { %802 = vmatpush.bf16.msrb.mxu3 %v1375_v6 }
  0x77   : > { %761 = vmatpush.bf16.msrb.mxu0 %v1175_v12  ;;  %v977_v12 = vand.u32 127, %v976_v9 }
  0x78   : > { %775 = vmatpush.bf16.msrb.mxu1 %v1239_v13 }
  0x79   : > { %789 = vmatpush.bf16.msrb.mxu2 %v1303_v14  ;;  %vm1027_vm0 = vcmp.eq.s32.totalorder %v977_v12, 2  ;;  %vm978_vm1 = vcmp.lt.s32.totalorder %v977_v12, 2 }
  0x7a   : > { %803 = vmatpush.bf16.msrb.mxu3 %v1367_v15  ;;  %762 = vmatmul.bf16.vlgmr.msrb.gmra.mxu0 %v2046_v59  ;;  %v1573_v59 = vld [vmem:[#allocation8 + $0x70] sm:$0xff] }
  0x7b   : > { %948 = vmatpush.bf16.msra.mxu0 %v1566_v16  ;;  %776 = vmatmul.bf16.vlgmr.msrb.gmra.mxu1 %v2050_v0  ;;  %v372_v0 = vld [vmem:[#allocation7] sm:$0x3] }
  0x7c   : > { %790 = vmatmul.bf16.vlgmr.msrb.gmra.mxu2 %v2044_v55  ;;  %962 = vmatpush.bf16.msra.mxu1 %v1574_v24  ;;  %v1572_v55 = vld [vmem:[#allocation8 + $0x68] sm:$0xff]  ;;  %v375_v49 = vperm.slane %v372_v0, 1 }
  0x7d   : > { %804 = vmatmul.bf16.vlgmr.msrb.gmra.mxu3 %v2048_v60  ;;  %v374_v60 = vperm.slane %v372_v0, 0 }
  0x7f   : > { %949 = vmatpush.bf16.msra.mxu0 %v1565_v17 }
  0x80   : > { %963 = vmatpush.bf16.msra.mxu1 %v1573_v59 }
  0x83   : > { %950 = vmatpush.bf16.msra.mxu0 %v1564_v18 }
  0x84   : > { %964 = vmatpush.bf16.msra.mxu1 %v1572_v55 }
  0x87   : > { %951 = vmatpush.bf16.msra.mxu0 %v1563_v19 }
  0x88   : > { %965 = vmatpush.bf16.msra.mxu1 %v1571_v25 }
  0x8b   : > { %952 = vmatpush.bf16.msra.mxu0 %v1562_v20 }
  0x8c   : > { %966 = vmatpush.bf16.msra.mxu1 %v1570_v30 }
  0x8f   : > { %953 = vmatpush.bf16.msra.mxu0 %v1561_v21 }
  0x90   : > { %967 = vmatpush.bf16.msra.mxu1 %v1569_v35 }
  0x93   : > { %954 = vmatpush.bf16.msra.mxu0 %v1560_v22 }
  0x94   : > { %968 = vmatpush.bf16.msra.mxu1 %v1568_v40 }
  0x97   : > { %955 = vmatpush.bf16.msra.mxu0 %v1559_v23 }
  0x98   : > { %969 = vmatpush.bf16.msra.mxu1 %v1567_v46 }
  0xd7   : > { %v707_v26 = vpop.f32.mrf.mxu0 }
  0xd8   : > { %v708_v27 = vadd.f32 %v707_v26, %v374_v60  ;;  %v721_v28 = vpop.f32.mrf.mxu1 }
  0xda   : > { %v722_v29 = vadd.f32 %v721_v28, %v708_v27 }
  0xdf   : > { %v735_v31 = vpop.f32.mrf.mxu2  ;;  %v709_v34 = vpop.f32.mrf.mxu0 }
  0xe0   : > { %v749_v32 = vpop.f32.mrf.mxu3  ;;  %v736_v33 = vadd.f32 %v735_v31, %v722_v29  ;;  %v710_v36 = vadd.f32 %v709_v34, %v374_v60  ;;  %v723_v37 = vpop.f32.mrf.mxu1 }
  0xe2   : > { %v724_v38 = vadd.f32 %v723_v37, %v710_v36  ;;  %v750_v39 = vadd.f32 %v749_v32, %v736_v33 }
  0xe4   : > { %v810_v44 = vmax.f32 %v750_v39, 0.0 }
  0xe7   : > { %v737_v41 = vpop.f32.mrf.mxu2 }
  0xe8   : > { %v738_v42 = vadd.f32 %v737_v41, %v724_v38  ;;  %v751_v43 = vpop.f32.mrf.mxu3 }
  0xea   : > { %v752_v45 = vadd.f32 %v751_v43, %v738_v42 }
  0xec   : > { %v812_v47 = vmax.f32 %v752_v45, 0.0 }
  0xee   : > { %v814_v48 = vpack.c.bf16 %v812_v47, %v810_v44 }
  0xf0   : > { %956 = vmatmul.bf16.vlgmr.msra.gmra.mxu0 %v814_v48 }
  0xf7   : > { %v763_v50 = vpop.f32.mrf.mxu0 }
  0xf8   : > { %v777_v51 = vpop.f32.mrf.mxu1  ;;  %v764_v52 = vadd.f32 %v763_v50, %v375_v49 }
  0xfa   : > { %v778_v54 = vadd.f32 %v777_v51, %v764_v52 }
  0xff   : > { %v791_v53 = vpop.f32.mrf.mxu2  ;;  %v765_v57 = vpop.f32.mrf.mxu0 }
 0x100   : > { %v805_v56 = vpop.f32.mrf.mxu3  ;;  %v766_v58 = vadd.f32 %v765_v57, %v375_v49  ;;  %v792_v61 = vadd.f32 %v791_v53, %v778_v54  ;;  %v779_v62 = vpop.f32.mrf.mxu1 }
 0x102   : > { %v780_v63 = vadd.f32 %v779_v62, %v766_v58  ;;  %v806_v2 = vadd.f32 %v805_v56, %v792_v61 }
 0x104   : > { %v811_v6 = vmax.f32 %v806_v2, 0.0 }
 0x107   : > { %v793_v1 = vpop.f32.mrf.mxu2 }
 0x108   : > { %v794_v3 = vadd.f32 %v793_v1, %v780_v63  ;;  %v807_v4 = vpop.f32.mrf.mxu3 }
 0x10a   : > { %v808_v5 = vadd.f32 %v807_v4, %v794_v3 }
 0x10c   : > { %v813_v7 = vmax.f32 %v808_v5, 0.0 }
 0x10e   : > { %v815_v8 = vpack.c.bf16 %v813_v7, %v811_v6 }
 0x110   : > { %970 = vmatmul.bf16.vlgmr.msra.gmra.mxu1 %v815_v8 }
 0x16d   : > { %v957_v10 = vpop.f32.mrf.mxu0 }
 0x16e   : > { %v958_v13 = vadd.f32 %v1661_v11, %v957_v10 }
 0x175   : > { %v959_v18 = vpop.f32.mrf.mxu0 }
 0x176   : > { %v960_v19 = vadd.f32 %v1661_v11, %v959_v18 }
 0x18d   : > { %v971_v14 = vpop.f32.mrf.mxu1 }
 0x18e   : > { %v972_v15 = vadd.f32 %v971_v14, %v958_v13 }
 0x190   : > { %v1028_v16 = vsel %vm1027_vm0, %v972_v15, 0.0  ;;  %v979_v17 = vsel %vm978_vm1, %v972_v15, -inf }
 0x191   : > { %981 = vmax.xlane.f32.xlu0 %v979_v17 }
 0x195   : > { %v973_v20 = vpop.f32.mrf.mxu1 }
 0x196   : > { %v974_v21 = vadd.f32 %v973_v20, %v960_v19 }
 0x198   : > { %v1029_v22 = vsel %vm1027_vm0, %v974_v21, 0.0  ;;  %v980_v23 = vsel %vm978_vm1, %v974_v21, -inf }
 0x199   : > { %983 = vmax.xlane.f32.xlu0 %v980_v23 }
 0x204   : > { %v982_v24 = vpop.xlane.xlu0 %981 }
 0x205   : > { %v985_v59 = vsub.f32 %v979_v17, %v982_v24 }
 0x207   : > { %v987_v0 = vmul.f32 1.442695, %v985_v59 }
 0x209   : > { %1662 = vpow2.f32 %v987_v0 }
 0x20c   : > { %v984_v55 = vpop.xlane.xlu0 %983 }
 0x20d   : > { %v986_v60 = vsub.f32 %v980_v23, %v984_v55 }
 0x20f   : > { %v1663_v25 = vpop.eup %1662  ;;  %v989_v26 = vmul.f32 1.442695, %v986_v60 }
 0x210   : > { %v991_v27 = vsel %vm978_vm1, %v1663_v25, 0.0 }
 0x211   : > { %1664 = vpow2.f32 %v989_v26  ;;  %993 = vadd.xlane.f32.xlu1 %v991_v27 }
 0x217   : > { %v1665_v28 = vpop.eup %1664 }
 0x218   : > { %v992_v29 = vsel %vm978_vm1, %v1665_v28, 0.0 }
 0x219   : > { %995 = vadd.xlane.f32.xlu1 %v992_v29 }
 0x284   : > { %v994_v30 = vpop.xlane.xlu1 %993 }
 0x285   : > { %1666 = vrcp.f32 %v994_v30  ;;  %v1008_v35 = vand.u32 2147483648, %v994_v30  ;;  %v1006_v37 = vand.u32 2147483647, %v994_v30  ;;  %vm1002_vm3 = vweird.f32 %v994_v30 }
 0x287   : > { %v1009_v40 = vor.u32 1.1754944e-38, %v1008_v35  ;;  %vm1007_vm5 = vcmp.eq.f32.partialorder %v1006_v37, 8.507059e+37 }
 0x28b   : > { %v1667_v31 = vpop.eup %1666 }
 0x28c   : > { %v998_v32 = vmul.f32 %v1667_v31, %v994_v30  ;;  %v996_v33 = vpop.xlane.xlu1 %995  ;;  %vm1003_vm2 = vweird.f32 %v1667_v31 }
 0x28d   : > { %1668 = vrcp.f32 %v996_v33  ;;  %vm1004_vm4 = vmor %vm1002_vm3, %vm1003_vm2  ;;  %v1023_v46 = vand.u32 2147483648, %v996_v33  ;;  %v1021_v49 = vand.u32 2147483647, %v996_v33  ;;  %vm1017_vm7 = vweird.f32 %v996_v33 }
 0x28e   : > { %v999_v34 = vsub.f32 1.0, %v998_v32 }
 0x28f   : > { %v1024_v51 = vor.u32 1.1754944e-38, %v1023_v46  ;;  %vm1022_vm9 = vcmp.eq.f32.partialorder %v1021_v49, 8.507059e+37 }
 0x290   : > { %v1000_v36 = vmul.f32 %v1667_v31, %v999_v34 }
 0x292   : > { %v1001_v38 = vadd.f32 %v1667_v31, %v1000_v36 }
 0x293   : > { %v1669_v39 = vpop.eup %1668 }
 0x294   : > { %v1005_v41 = vsel %vm1004_vm4, %v1667_v31, %v1001_v38  ;;  %v1013_v42 = vmul.f32 %v1669_v39, %v996_v33  ;;  %vm1018_vm6 = vweird.f32 %v1669_v39 }
 0x295   : > { %v1010_v43 = vsel %vm1007_vm5, %v1009_v40, %v1005_v41  ;;  %vm1019_vm8 = vmor %vm1017_vm7, %vm1018_vm6 }
 0x296   : > { %v1011_v44 = vmul.f32 %v1010_v43, %v991_v27  ;;  %v1014_v45 = vsub.f32 1.0, %v1013_v42 }
 0x298   : > { %v1030_v47 = vadd.f32 %v1028_v16, %v1011_v44  ;;  %v1015_v48 = vmul.f32 %v1669_v39, %v1014_v45 }
 0x29a   : > { %v1016_v50 = vadd.f32 %v1669_v39, %v1015_v48  ;;  %1032 = vst [vmem:[%s293_s12] sm:$0xff] %v1030_v47 }
 0x29c   : > { %v1020_v52 = vsel %vm1019_vm8, %v1669_v39, %v1016_v50 }
 0x29d   : > { %v1025_v53 = vsel %vm1022_vm9, %v1024_v51, %v1020_v52 }
 0x29e   : > { %v1026_v54 = vmul.f32 %v1025_v53, %v992_v29 }
 0x2a0   : > { %v1031_v56 = vadd.f32 %v1029_v22, %v1026_v54 }
 0x2a2   : > { %1033 = vst [vmem:[%s293_s12 + $0x8] sm:$0xff] %v1031_v56 }
 0x2a3   : > { %1817 = shalt.err (!%p1814_p10)
}
 0x2a4   : > { %s1875_s17 = smov 128   ;;  %s1876_s16 = smov 8  }
 0x2a5   : > { %1590 = dma.vmem_to_hbm [thread:$0]  (%p1990_p7), %s1048_s22, 256, %s1050_s13, %s1035_s14, %s1875_s17, %s1875_s17, %s1876_s16  }
 0x2a6 PF: > { %s1064_s23 = sand.u32 1, %s1852_s18   ;;  %p2113_p12 = scmp.ge.s32.totalorder %s1864_s21, 2 }
 0x2a7   : > { %s1065_s26 = scalar_lea.sflag [#allocation4], %s1064_s23 }
 0x2a8   : > { %p1607_p13 = pnand %p2113_p12, %p1942_p6 }
 0x2aa   : > { %p1608_p0 = pneg %p1607_p13 }
 0x2ac   : > { %1847 = dma.done.wait (%p1608_p0), %s1065_s26, 256  }
 0x2ad   : > { %1849 = vsyncadd (%p1608_p0), %s1065_s26, 4294967040  ;;  %p20_p3 = scmp.ge.s32.totalorder %s1976_s30, 4   ;;  %s2114_s18 = smov %s1856_s19 }
 0x2ae   : > { %s2115_s19 = smov %s1860_s20  ;;  %s2116_s20 = smov %s1986_s9 }
 0x2af   : > { %s2117_s21 = smov %s1976_s30  ;;  %22 = sbr.rel (!%p20_p3) target bundleno = 7 (0x7), region = 97 }
 0x2b4   :  { %1071 = vsyncpa [#allocation3], 1 }
 0x2b5   :  { %1073 = vsyncpa [#allocation3 + $0x1], 1 }
 0x2b6   :  { %1074 = vsyncpa [#allocation6], 1 }
 0x2b7   :  { %1075 = vsyncpa [#allocation9], 1 }
 0x2b8   :  { %1076 = vsyncpa [#allocation4], 1 }
 0x2b9   :  { %1078 = vsyncpa [#allocation4 + $0x1], 1 }

</bundles_post_ra>
